<compile_context>
chip_gen: v7x
topology: tpu7x:2x2x1
jax: 0.10.0
libtpu: 0.0.40
codegen_flags: <defaults>
</compile_context>

<pallas_src>
import functools

import jax
import jax.numpy as jnp
from jax.experimental import pallas as pl
from jax.experimental.pallas import tpu as pltpu


# ----------------------------------------------------------------------------
# Fused Pallas kernel: causal stack -> residual stack -> head, one batch elem.
# ----------------------------------------------------------------------------
def _wavenet_fused_kernel(x_ref, *refs, K, dilations, n_causal):
    """Fused WaveNet forward for one batch element.

    x_ref: (1, T, Q) embedded input.
    refs (in order):
      causal layers:  n_causal * [ wc (K, C_in, C_res), bc (1, C_res) ]
      residual stack: wd (L*K, C_res, C_gate), bd (L, 1, C_gate),
                      wr (L, C_gate, C_res),   br (L, 1, C_res),
                      ws (L, C_gate, C_skip),  bs (L, 1, C_skip)
      head:           w1 (C_skip, C_skip), b1 (1, C_skip),
                      w2 (C_skip, Q),      b2 (1, Q)
      output:         o_ref (1, 1, Q)
    """
    idx = 0
    causal = []
    for _ in range(n_causal):
        causal.append((refs[idx], refs[idx + 1]))
        idx += 2
    wd_ref, bd_ref, wr_ref, br_ref, ws_ref, bs_ref = refs[idx:idx + 6]
    idx += 6
    w1_ref, b1_ref, w2_ref, b2_ref = refs[idx:idx + 4]
    idx += 4
    o_ref = refs[idx]

    L = len(dilations)
    C_gate = bd_ref.shape[-1]
    C_skip = ws_ref.shape[-1]

    x = x_ref[0].astype(jnp.float32)                       # (T, Q)

    # ---- causal conv stack: left zero-pad by K-1 (fused), keep first T-1 ----
    for (wc_ref, bc_ref) in causal:
        t_cur, c_in = x.shape
        t_out = t_cur - 1
        xp = jnp.concatenate(
            [jnp.zeros((K - 1, c_in), jnp.float32), x], axis=0)   # (t_cur+K-1, c_in)
        acc = jnp.zeros((t_out, wc_ref.shape[-1]), jnp.float32) + bc_ref[...]
        for j in range(K):                                        # K small, static
            acc += jnp.dot(xp[j:j + t_out, :], wc_ref[j],
                           preferred_element_type=jnp.float32)
        x = acc                                                   # (t_out, C_res)

    # ---- per-layer output lengths (static) ----
    t_l = [x.shape[0]]
    for d in dilations:
        t_l.append(t_l[-1] - d * (K - 1))
    l_final = t_l[-1]

    skip_sum = jnp.zeros((1, C_skip), jnp.float32)

    # ---- residual stack (static unroll; x stays in VMEM/vregs) ----
    for l, d in enumerate(dilations):
        t_out = t_l[l + 1]
        t_sel = t_out - l_final                 # single skip timestep consumed
        is_last = (l == L - 1)

        if is_last:
            # Only z at row t_sel (== 0) is consumed; compute just that row and
            # drop the residual projection (its output is never used).
            conv = jnp.zeros((1, C_gate), jnp.float32) + bd_ref[l]
            for j in range(K):
                conv += jnp.dot(x[t_sel + j * d: t_sel + j * d + 1, :],
                                wd_ref[l * K + j],
                                preferred_element_type=jnp.float32)
            z = jnp.tanh(conv) * jax.nn.sigmoid(conv)             # (1, C_gate)
            skip_sum = skip_sum + (
                jnp.dot(z, ws_ref[l], preferred_element_type=jnp.float32)
                + bs_ref[l])
        else:
            conv = jnp.zeros((t_out, C_gate), jnp.float32) + bd_ref[l]
            for j in range(K):
                conv += jnp.dot(x[j * d: j * d + t_out, :], wd_ref[l * K + j],
                                preferred_element_type=jnp.float32)
            z = jnp.tanh(conv) * jax.nn.sigmoid(conv)             # (t_out, C_gate)

            # skip: only the single consumed timestep
            z_sel = z[t_sel:t_sel + 1, :]
            skip_sum = skip_sum + (
                jnp.dot(z_sel, ws_ref[l], preferred_element_type=jnp.float32)
                + bs_ref[l])

            # residual (feeds the next layer), with clipped input add
            res = jnp.dot(z, wr_ref[l],
                          preferred_element_type=jnp.float32) + br_ref[l]
            x = res + x[x.shape[0] - t_out:, :]

    # ---- head: sum(skips) -> ReLU -> 1x1 -> ReLU -> 1x1 -> softmax ----
    h = jnp.maximum(skip_sum, 0.0)
    h = jnp.maximum(
        jnp.dot(h, w1_ref[...], preferred_element_type=jnp.float32) + b1_ref[...],
        0.0)
    logits = jnp.dot(h, w2_ref[...],
                     preferred_element_type=jnp.float32) + b2_ref[...]
    m = jnp.max(logits, axis=-1, keepdims=True)
    e = jnp.exp(logits - m)
    probs = e / jnp.sum(e, axis=-1, keepdims=True)
    o_ref[0] = probs.astype(o_ref.dtype)


def _replicated_spec(shape):
    """Full-array block replicated across the batch grid."""
    n = len(shape)
    return pl.BlockSpec(shape, lambda i, _n=n: (0,) * _n)


# ----------------------------------------------------------------------------
# Glue: mu-law, embedding, parameter setup, full forward
# ----------------------------------------------------------------------------
def mu_law(x, quantize_channels):
    # TODO(synk): `muLaw` is not defined in the reference source; standard
    # torchaudio MuLawEncoding semantics are used (int codes in [0, Q-1]).
    mu = float(quantize_channels - 1)
    x = jnp.clip(x, -1.0, 1.0)
    y = jnp.sign(x) * jnp.log1p(mu * jnp.abs(x)) / jnp.log1p(mu)
    return ((y + 1.0) / 2.0 * mu + 0.5).astype(jnp.int32)


def init_params(key, *, num_residual_layers=2, num_blocks=1, num_casual_layers=2,
                residual_channels=32, gate_channels=32, skip_channels=128,
                quantize_channels=256, kernel_size=3, param_dtype=jnp.float32):
    keys = iter(jax.random.split(key, 64))

    def w(shape, fan_in):
        return (jax.random.normal(next(keys), shape, jnp.float32)
                / jnp.sqrt(float(fan_in))).astype(param_dtype)

    params = {
        "quantize_channels": quantize_channels,
        "kernel_size": kernel_size,
        "embedding": (jax.random.normal(
            next(keys), (quantize_channels, quantize_channels),
            jnp.float32) * 0.1).astype(param_dtype),
    }

    causal = []
    in_c = quantize_channels
    for _ in range(num_casual_layers):
        causal.append((w((kernel_size, in_c, residual_channels), in_c * kernel_size),
                       jnp.zeros((1, residual_channels), param_dtype)))
        in_c = residual_channels
    params["causal"] = causal

    # ModuleList(residual_layers * num_blocks) in PyTorch repeats the SAME module
    # objects -> shared parameters across blocks.  Replicate that sharing, then
    # stack the (repeated) sequence for the fused kernel.
    res_layers = []
    for _ in range(num_residual_layers):
        res_layers.append((
            w((kernel_size, residual_channels, gate_channels),
              residual_channels * kernel_size),
            jnp.zeros((1, gate_channels), param_dtype),
            w((gate_channels, residual_channels), gate_channels),
            jnp.zeros((1, residual_channels), param_dtype),
            w((gate_channels, skip_channels), gate_channels),
            jnp.zeros((1, skip_channels), param_dtype),
        ))
    seq = res_layers * num_blocks
    params["dilations"] = [2 ** i for i in range(num_residual_layers)] * num_blocks
    params["residual_stacked"] = (
        jnp.concatenate([lw[0] for lw in seq], axis=0),   # (L*K, C_res, C_gate)
        jnp.stack([lw[1] for lw in seq], axis=0),         # (L, 1, C_gate)
        jnp.stack([lw[2] for lw in seq], axis=0),         # (L, C_gate, C_res)
        jnp.stack([lw[3] for lw in seq], axis=0),         # (L, 1, C_res)
        jnp.stack([lw[4] for lw in seq], axis=0),         # (L, C_gate, C_skip)
        jnp.stack([lw[5] for lw in seq], axis=0),         # (L, 1, C_skip)
    )

    params["head"] = (w((skip_channels, skip_channels), skip_channels),
                      jnp.zeros((1, skip_channels), param_dtype),
                      w((skip_channels, quantize_channels), skip_channels),
                      jnp.zeros((1, quantize_channels), param_dtype))
    return params


def wavenet_forward(params, inputs):
    """inputs: (B, 1, T) float32 in [-1, 1]. Returns (B, Q, 1) softmax probs."""
    Q = params["quantize_channels"]
    K = params["kernel_size"]
    dilations = tuple(params["dilations"])
    n_causal = len(params["causal"])

    # mu-law quantization + embedding lookup (gather stays in JAX glue).
    q = mu_law(inputs, Q)                                   # (B, 1, T) int32
    x = jnp.take(params["embedding"], q[:, 0, :], axis=0)   # (B, T, Q)
    B, T, _ = x.shape

    args = [x]
    in_specs = [pl.BlockSpec((1, T, Q), lambda i: (i, 0, 0))]
    for (wc, bc) in params["causal"]:
        args += [wc, bc]
        in_specs += [_replicated_spec(wc.shape), _replicated_spec(bc.shape)]
    for w_ in params["residual_stacked"]:
        args.append(w_)
        in_specs.append(_replicated_spec(w_.shape))
    for w_ in params["head"]:
        args.append(w_)
        in_specs.append(_replicated_spec(w_.shape))

    kernel = functools.partial(_wavenet_fused_kernel, K=K, dilations=dilations,
                               n_causal=n_causal)
    # TODO(synk): for very large T, add a time-tile grid axis with a
    # receptive-field halo so blocks fit v7x's 64 MiB VMEM.
    out = pl.pallas_call(
        kernel,
        out_shape=jax.ShapeDtypeStruct((B, 1, Q), jnp.float32),
        grid=(B,),
        in_specs=in_specs,
        out_specs=pl.BlockSpec((1, 1, Q), lambda i: (i, 0, 0)),
        compiler_params=pltpu.CompilerParams(
            dimension_semantics=("parallel",),
            vmem_limit_bytes=48 * 1024 * 1024),
    )(*args)
    return out[:, 0, :, None]                               # (B, Q, 1)


# ----------------------------------------------------------------------------
if __name__ == "__main__":
    key = jax.random.PRNGKey(0)
    pkey, xkey = jax.random.split(key)

    # Small config: num_residual_layers=2, num_blocks=1, num_casual_layers=2.
    params = init_params(pkey,
                         num_residual_layers=2, num_blocks=1, num_casual_layers=2,
                         residual_channels=32, gate_channels=32, skip_channels=128,
                         quantize_channels=256, kernel_size=3)

    B, T = 2, 24
    inputs = jax.random.uniform(xkey, (B, 1, T), jnp.float32,
                                minval=-1.0, maxval=1.0)

    out = wavenet_forward(params, inputs)
    out = jax.block_until_ready(out)

    assert out.shape == (B, 256, 1), out.shape
    assert bool(jnp.all(jnp.isfinite(out)))
    # softmax over the quantization axis sums to 1
    assert bool(jnp.allclose(jnp.sum(out[:, :, 0], axis=1), 1.0, atol=1e-4))
    print("KERNEL_OK")
</pallas_src>

<mosaic_0001>
module attributes {stable_mosaic.version = 11 : i64} {
  func.func @_wavenet_fused_kernel(%arg0: i32, %arg1: memref<1x24x256xf32, #tpu.memory_space<vmem>>, %arg2: memref<3x256x32xf32, #tpu.memory_space<vmem>>, %arg3: memref<1x32xf32, #tpu.memory_space<vmem>>, %arg4: memref<3x32x32xf32, #tpu.memory_space<vmem>>, %arg5: memref<1x32xf32, #tpu.memory_space<vmem>>, %arg6: memref<6x32x32xf32, #tpu.memory_space<vmem>>, %arg7: memref<2x1x32xf32, #tpu.memory_space<vmem>>, %arg8: memref<2x32x32xf32, #tpu.memory_space<vmem>>, %arg9: memref<2x1x32xf32, #tpu.memory_space<vmem>>, %arg10: memref<2x32x128xf32, #tpu.memory_space<vmem>>, %arg11: memref<2x1x128xf32, #tpu.memory_space<vmem>>, %arg12: memref<128x128xf32, #tpu.memory_space<vmem>>, %arg13: memref<1x128xf32, #tpu.memory_space<vmem>>, %arg14: memref<128x256xf32, #tpu.memory_space<vmem>>, %arg15: memref<1x256xf32, #tpu.memory_space<vmem>>, %arg16: memref<1x1x256xf32, #tpu.memory_space<vmem>>) attributes {dimension_semantics = [#tpu.dimension_semantics<parallel>], iteration_bounds = array<i64: 2>, scalar_prefetch = 0 : i64, scratch_operands = 0 : i64, tpu.core_type = #tpu.core_type<tc>, window_params = [{transform_indices = @transform_0, window_bounds = array<i64: 1, 24, 256>}, {pipeline_mode = #tpu.pipeline_mode<synchronous>, transform_indices = @transform_1, window_bounds = array<i64: 3, 256, 32>}, {pipeline_mode = #tpu.pipeline_mode<synchronous>, transform_indices = @transform_2, window_bounds = array<i64: 1, 32>}, {pipeline_mode = #tpu.pipeline_mode<synchronous>, transform_indices = @transform_3, window_bounds = array<i64: 3, 32, 32>}, {pipeline_mode = #tpu.pipeline_mode<synchronous>, transform_indices = @transform_4, window_bounds = array<i64: 1, 32>}, {pipeline_mode = #tpu.pipeline_mode<synchronous>, transform_indices = @transform_5, window_bounds = array<i64: 6, 32, 32>}, {pipeline_mode = #tpu.pipeline_mode<synchronous>, transform_indices = @transform_6, window_bounds = array<i64: 2, 1, 32>}, {pipeline_mode = #tpu.pipeline_mode<synchronous>, transform_indices = @transform_7, window_bounds = array<i64: 2, 32, 32>}, {pipeline_mode = #tpu.pipeline_mode<synchronous>, transform_indices = @transform_8, window_bounds = array<i64: 2, 1, 32>}, {pipeline_mode = #tpu.pipeline_mode<synchronous>, transform_indices = @transform_9, window_bounds = array<i64: 2, 32, 128>}, {pipeline_mode = #tpu.pipeline_mode<synchronous>, transform_indices = @transform_10, window_bounds = array<i64: 2, 1, 128>}, {pipeline_mode = #tpu.pipeline_mode<synchronous>, transform_indices = @transform_11, window_bounds = array<i64: 128, 128>}, {pipeline_mode = #tpu.pipeline_mode<synchronous>, transform_indices = @transform_12, window_bounds = array<i64: 1, 128>}, {pipeline_mode = #tpu.pipeline_mode<synchronous>, transform_indices = @transform_13, window_bounds = array<i64: 128, 256>}, {pipeline_mode = #tpu.pipeline_mode<synchronous>, transform_indices = @transform_14, window_bounds = array<i64: 1, 256>}, {transform_indices = @transform_15, window_bounds = array<i64: 1, 1, 256>}]} {
    %c0 = arith.constant 0 : index
    %c0_0 = arith.constant 0 : index
    %c0_1 = arith.constant 0 : index
    %0 = vector.load %arg1[%c0, %c0_0, %c0_1] : memref<1x24x256xf32, #tpu.memory_space<vmem>>, vector<1x24x256xf32>
    %1 = vector.shape_cast %0 : vector<1x24x256xf32> to vector<24x256xf32>
    %cst = arith.constant 0.000000e+00 : f32
    %2 = vector.broadcast %cst : f32 to vector<2x256xf32>
    %3 = tpu.concatenate %2, %1 in 0 : vector<2x256xf32>, vector<24x256xf32> -> vector<26x256xf32>
    %cst_2 = arith.constant 0.000000e+00 : f32
    %4 = vector.broadcast %cst_2 : f32 to vector<23x32xf32>
    %c0_3 = arith.constant 0 : index
    %c0_4 = arith.constant 0 : index
    %5 = vector.load %arg3[%c0_3, %c0_4] : memref<1x32xf32, #tpu.memory_space<vmem>>, vector<1x32xf32>
    %6 = vector.broadcast %5 : vector<1x32xf32> to vector<23x32xf32>
    %7 = arith.addf %4, %6 : vector<23x32xf32>
    %8 = vector.extract_strided_slice %3 {offsets = [0, 0], sizes = [23, 256], strides = [1, 1]} : vector<26x256xf32> to vector<23x256xf32>
    %c0_5 = arith.constant 0 : index
    %c0_6 = arith.constant 0 : index
    %c0_7 = arith.constant 0 : index
    %9 = vector.load %arg2[%c0_5, %c0_6, %c0_7] : memref<3x256x32xf32, #tpu.memory_space<vmem>>, vector<1x256x32xf32>
    %10 = vector.shape_cast %9 : vector<1x256x32xf32> to vector<256x32xf32>
    %cst_8 = arith.constant dense<0.000000e+00> : vector<23x32xf32>
    %11 = tpu.matmul %8, %10, %cst_8 {dimension_numbers = #tpu.dot_dimension_numbers<[1], [0], [0], [1], [0, 0, 1, 1], [], []>} : vector<23x256xf32>, vector<256x32xf32>, vector<23x32xf32> -> vector<23x32xf32>
    %12 = arith.addf %7, %11 : vector<23x32xf32>
    %13 = vector.extract_strided_slice %3 {offsets = [1, 0], sizes = [23, 256], strides = [1, 1]} : vector<26x256xf32> to vector<23x256xf32>
    %c1 = arith.constant 1 : index
    %c0_9 = arith.constant 0 : index
    %c0_10 = arith.constant 0 : index
    %14 = vector.load %arg2[%c1, %c0_9, %c0_10] : memref<3x256x32xf32, #tpu.memory_space<vmem>>, vector<1x256x32xf32>
    %15 = vector.shape_cast %14 : vector<1x256x32xf32> to vector<256x32xf32>
    %cst_11 = arith.constant dense<0.000000e+00> : vector<23x32xf32>
    %16 = tpu.matmul %13, %15, %cst_11 {dimension_numbers = #tpu.dot_dimension_numbers<[1], [0], [0], [1], [0, 0, 1, 1], [], []>} : vector<23x256xf32>, vector<256x32xf32>, vector<23x32xf32> -> vector<23x32xf32>
    %17 = arith.addf %12, %16 : vector<23x32xf32>
    %18 = vector.extract_strided_slice %3 {offsets = [2, 0], sizes = [23, 256], strides = [1, 1]} : vector<26x256xf32> to vector<23x256xf32>
    %c2 = arith.constant 2 : index
    %c0_12 = arith.constant 0 : index
    %c0_13 = arith.constant 0 : index
    %19 = vector.load %arg2[%c2, %c0_12, %c0_13] : memref<3x256x32xf32, #tpu.memory_space<vmem>>, vector<1x256x32xf32>
    %20 = vector.shape_cast %19 : vector<1x256x32xf32> to vector<256x32xf32>
    %cst_14 = arith.constant dense<0.000000e+00> : vector<23x32xf32>
    %21 = tpu.matmul %18, %20, %cst_14 {dimension_numbers = #tpu.dot_dimension_numbers<[1], [0], [0], [1], [0, 0, 1, 1], [], []>} : vector<23x256xf32>, vector<256x32xf32>, vector<23x32xf32> -> vector<23x32xf32>
    %22 = arith.addf %17, %21 : vector<23x32xf32>
    %cst_15 = arith.constant 0.000000e+00 : f32
    %23 = vector.broadcast %cst_15 : f32 to vector<2x32xf32>
    %24 = tpu.concatenate %23, %22 in 0 : vector<2x32xf32>, vector<23x32xf32> -> vector<25x32xf32>
    %cst_16 = arith.constant 0.000000e+00 : f32
    %25 = vector.broadcast %cst_16 : f32 to vector<22x32xf32>
    %c0_17 = arith.constant 0 : index
    %c0_18 = arith.constant 0 : index
    %26 = vector.load %arg5[%c0_17, %c0_18] : memref<1x32xf32, #tpu.memory_space<vmem>>, vector<1x32xf32>
    %27 = vector.broadcast %26 : vector<1x32xf32> to vector<22x32xf32>
    %28 = arith.addf %25, %27 : vector<22x32xf32>
    %29 = vector.extract_strided_slice %24 {offsets = [0, 0], sizes = [22, 32], strides = [1, 1]} : vector<25x32xf32> to vector<22x32xf32>
    %c0_19 = arith.constant 0 : index
    %c0_20 = arith.constant 0 : index
    %c0_21 = arith.constant 0 : index
    %30 = vector.load %arg4[%c0_19, %c0_20, %c0_21] : memref<3x32x32xf32, #tpu.memory_space<vmem>>, vector<1x32x32xf32>
    %31 = vector.shape_cast %30 : vector<1x32x32xf32> to vector<32x32xf32>
    %cst_22 = arith.constant dense<0.000000e+00> : vector<22x32xf32>
    %32 = tpu.matmul %29, %31, %cst_22 {dimension_numbers = #tpu.dot_dimension_numbers<[1], [0], [0], [1], [0, 0, 1, 1], [], []>} : vector<22x32xf32>, vector<32x32xf32>, vector<22x32xf32> -> vector<22x32xf32>
    %33 = arith.addf %28, %32 : vector<22x32xf32>
    %34 = vector.extract_strided_slice %24 {offsets = [1, 0], sizes = [22, 32], strides = [1, 1]} : vector<25x32xf32> to vector<22x32xf32>
    %c1_23 = arith.constant 1 : index
    %c0_24 = arith.constant 0 : index
    %c0_25 = arith.constant 0 : index
    %35 = vector.load %arg4[%c1_23, %c0_24, %c0_25] : memref<3x32x32xf32, #tpu.memory_space<vmem>>, vector<1x32x32xf32>
    %36 = vector.shape_cast %35 : vector<1x32x32xf32> to vector<32x32xf32>
    %cst_26 = arith.constant dense<0.000000e+00> : vector<22x32xf32>
    %37 = tpu.matmul %34, %36, %cst_26 {dimension_numbers = #tpu.dot_dimension_numbers<[1], [0], [0], [1], [0, 0, 1, 1], [], []>} : vector<22x32xf32>, vector<32x32xf32>, vector<22x32xf32> -> vector<22x32xf32>
    %38 = arith.addf %33, %37 : vector<22x32xf32>
    %39 = vector.extract_strided_slice %24 {offsets = [2, 0], sizes = [22, 32], strides = [1, 1]} : vector<25x32xf32> to vector<22x32xf32>
    %c2_27 = arith.constant 2 : index
    %c0_28 = arith.constant 0 : index
    %c0_29 = arith.constant 0 : index
    %40 = vector.load %arg4[%c2_27, %c0_28, %c0_29] : memref<3x32x32xf32, #tpu.memory_space<vmem>>, vector<1x32x32xf32>
    %41 = vector.shape_cast %40 : vector<1x32x32xf32> to vector<32x32xf32>
    %cst_30 = arith.constant dense<0.000000e+00> : vector<22x32xf32>
    %42 = tpu.matmul %39, %41, %cst_30 {dimension_numbers = #tpu.dot_dimension_numbers<[1], [0], [0], [1], [0, 0, 1, 1], [], []>} : vector<22x32xf32>, vector<32x32xf32>, vector<22x32xf32> -> vector<22x32xf32>
    %43 = arith.addf %38, %42 : vector<22x32xf32>
    %cst_31 = arith.constant 0.000000e+00 : f32
    %44 = vector.broadcast %cst_31 : f32 to vector<1x128xf32>
    %cst_32 = arith.constant 0.000000e+00 : f32
    %45 = vector.broadcast %cst_32 : f32 to vector<20x32xf32>
    %c0_33 = arith.constant 0 : index
    %c0_34 = arith.constant 0 : index
    %c0_35 = arith.constant 0 : index
    %46 = vector.load %arg7[%c0_33, %c0_34, %c0_35] : memref<2x1x32xf32, #tpu.memory_space<vmem>>, vector<1x1x32xf32>
    %47 = vector.shape_cast %46 : vector<1x1x32xf32> to vector<1x32xf32>
    %48 = vector.broadcast %47 : vector<1x32xf32> to vector<20x32xf32>
    %49 = arith.addf %45, %48 : vector<20x32xf32>
    %50 = vector.extract_strided_slice %43 {offsets = [0, 0], sizes = [20, 32], strides = [1, 1]} : vector<22x32xf32> to vector<20x32xf32>
    %c0_36 = arith.constant 0 : index
    %c0_37 = arith.constant 0 : index
    %c0_38 = arith.constant 0 : index
    %51 = vector.load %arg6[%c0_36, %c0_37, %c0_38] : memref<6x32x32xf32, #tpu.memory_space<vmem>>, vector<1x32x32xf32>
    %52 = vector.shape_cast %51 : vector<1x32x32xf32> to vector<32x32xf32>
    %cst_39 = arith.constant dense<0.000000e+00> : vector<20x32xf32>
    %53 = tpu.matmul %50, %52, %cst_39 {dimension_numbers = #tpu.dot_dimension_numbers<[1], [0], [0], [1], [0, 0, 1, 1], [], []>} : vector<20x32xf32>, vector<32x32xf32>, vector<20x32xf32> -> vector<20x32xf32>
    %54 = arith.addf %49, %53 : vector<20x32xf32>
    %55 = vector.extract_strided_slice %43 {offsets = [1, 0], sizes = [20, 32], strides = [1, 1]} : vector<22x32xf32> to vector<20x32xf32>
    %c1_40 = arith.constant 1 : index
    %c0_41 = arith.constant 0 : index
    %c0_42 = arith.constant 0 : index
    %56 = vector.load %arg6[%c1_40, %c0_41, %c0_42] : memref<6x32x32xf32, #tpu.memory_space<vmem>>, vector<1x32x32xf32>
    %57 = vector.shape_cast %56 : vector<1x32x32xf32> to vector<32x32xf32>
    %cst_43 = arith.constant dense<0.000000e+00> : vector<20x32xf32>
    %58 = tpu.matmul %55, %57, %cst_43 {dimension_numbers = #tpu.dot_dimension_numbers<[1], [0], [0], [1], [0, 0, 1, 1], [], []>} : vector<20x32xf32>, vector<32x32xf32>, vector<20x32xf32> -> vector<20x32xf32>
    %59 = arith.addf %54, %58 : vector<20x32xf32>
    %60 = vector.extract_strided_slice %43 {offsets = [2, 0], sizes = [20, 32], strides = [1, 1]} : vector<22x32xf32> to vector<20x32xf32>
    %c2_44 = arith.constant 2 : index
    %c0_45 = arith.constant 0 : index
    %c0_46 = arith.constant 0 : index
    %61 = vector.load %arg6[%c2_44, %c0_45, %c0_46] : memref<6x32x32xf32, #tpu.memory_space<vmem>>, vector<1x32x32xf32>
    %62 = vector.shape_cast %61 : vector<1x32x32xf32> to vector<32x32xf32>
    %cst_47 = arith.constant dense<0.000000e+00> : vector<20x32xf32>
    %63 = tpu.matmul %60, %62, %cst_47 {dimension_numbers = #tpu.dot_dimension_numbers<[1], [0], [0], [1], [0, 0, 1, 1], [], []>} : vector<20x32xf32>, vector<32x32xf32>, vector<20x32xf32> -> vector<20x32xf32>
    %64 = arith.addf %59, %63 : vector<20x32xf32>
    %65 = math.tanh %64 : vector<20x32xf32>
    %66 = arith.negf %64 : vector<20x32xf32>
    %67 = math.exp %66 : vector<20x32xf32>
    %cst_48 = arith.constant 1.000000e+00 : f32
    %68 = vector.broadcast %cst_48 : f32 to vector<20x32xf32>
    %69 = arith.addf %68, %67 : vector<20x32xf32>
    %70 = arith.divf %68, %69 : vector<20x32xf32>
    %71 = arith.mulf %65, %70 : vector<20x32xf32>
    %72 = vector.extract_strided_slice %71 {offsets = [4, 0], sizes = [1, 32], strides = [1, 1]} : vector<20x32xf32> to vector<1x32xf32>
    %c0_49 = arith.constant 0 : index
    %c0_50 = arith.constant 0 : index
    %c0_51 = arith.constant 0 : index
    %73 = vector.load %arg10[%c0_49, %c0_50, %c0_51] : memref<2x32x128xf32, #tpu.memory_space<vmem>>, vector<1x32x128xf32>
    %74 = vector.shape_cast %73 : vector<1x32x128xf32> to vector<32x128xf32>
    %cst_52 = arith.constant dense<0.000000e+00> : vector<1x128xf32>
    %75 = tpu.matmul %72, %74, %cst_52 {dimension_numbers = #tpu.dot_dimension_numbers<[1], [0], [0], [1], [0, 0, 1, 1], [], []>} : vector<1x32xf32>, vector<32x128xf32>, vector<1x128xf32> -> vector<1x128xf32>
    %c0_53 = arith.constant 0 : index
    %c0_54 = arith.constant 0 : index
    %c0_55 = arith.constant 0 : index
    %76 = vector.load %arg11[%c0_53, %c0_54, %c0_55] : memref<2x1x128xf32, #tpu.memory_space<vmem>>, vector<1x1x128xf32>
    %77 = vector.shape_cast %76 : vector<1x1x128xf32> to vector<1x128xf32>
    %78 = arith.addf %75, %77 : vector<1x128xf32>
    %79 = arith.addf %44, %78 : vector<1x128xf32>
    %c0_56 = arith.constant 0 : index
    %c0_57 = arith.constant 0 : index
    %c0_58 = arith.constant 0 : index
    %80 = vector.load %arg8[%c0_56, %c0_57, %c0_58] : memref<2x32x32xf32, #tpu.memory_space<vmem>>, vector<1x32x32xf32>
    %81 = vector.shape_cast %80 : vector<1x32x32xf32> to vector<32x32xf32>
    %cst_59 = arith.constant dense<0.000000e+00> : vector<20x32xf32>
    %82 = tpu.matmul %71, %81, %cst_59 {dimension_numbers = #tpu.dot_dimension_numbers<[1], [0], [0], [1], [0, 0, 1, 1], [], []>} : vector<20x32xf32>, vector<32x32xf32>, vector<20x32xf32> -> vector<20x32xf32>
    %c0_60 = arith.constant 0 : index
    %c0_61 = arith.constant 0 : index
    %c0_62 = arith.constant 0 : index
    %83 = vector.load %arg9[%c0_60, %c0_61, %c0_62] : memref<2x1x32xf32, #tpu.memory_space<vmem>>, vector<1x1x32xf32>
    %84 = vector.shape_cast %83 : vector<1x1x32xf32> to vector<1x32xf32>
    %85 = vector.broadcast %84 : vector<1x32xf32> to vector<20x32xf32>
    %86 = arith.addf %82, %85 : vector<20x32xf32>
    %87 = vector.extract_strided_slice %43 {offsets = [2, 0], sizes = [20, 32], strides = [1, 1]} : vector<22x32xf32> to vector<20x32xf32>
    %88 = arith.addf %86, %87 : vector<20x32xf32>
    %cst_63 = arith.constant 0.000000e+00 : f32
    %89 = vector.broadcast %cst_63 : f32 to vector<1x32xf32>
    %c1_64 = arith.constant 1 : index
    %c0_65 = arith.constant 0 : index
    %c0_66 = arith.constant 0 : index
    %90 = vector.load %arg7[%c1_64, %c0_65, %c0_66] : memref<2x1x32xf32, #tpu.memory_space<vmem>>, vector<1x1x32xf32>
    %91 = vector.shape_cast %90 : vector<1x1x32xf32> to vector<1x32xf32>
    %92 = arith.addf %89, %91 : vector<1x32xf32>
    %93 = vector.extract_strided_slice %88 {offsets = [0, 0], sizes = [1, 32], strides = [1, 1]} : vector<20x32xf32> to vector<1x32xf32>
    %c3 = arith.constant 3 : index
    %c0_67 = arith.constant 0 : index
    %c0_68 = arith.constant 0 : index
    %94 = vector.load %arg6[%c3, %c0_67, %c0_68] : memref<6x32x32xf32, #tpu.memory_space<vmem>>, vector<1x32x32xf32>
    %95 = vector.shape_cast %94 : vector<1x32x32xf32> to vector<32x32xf32>
    %cst_69 = arith.constant dense<0.000000e+00> : vector<1x32xf32>
    %96 = tpu.matmul %93, %95, %cst_69 {dimension_numbers = #tpu.dot_dimension_numbers<[1], [0], [0], [1], [0, 0, 1, 1], [], []>} : vector<1x32xf32>, vector<32x32xf32>, vector<1x32xf32> -> vector<1x32xf32>
    %97 = arith.addf %92, %96 : vector<1x32xf32>
    %98 = vector.extract_strided_slice %88 {offsets = [2, 0], sizes = [1, 32], strides = [1, 1]} : vector<20x32xf32> to vector<1x32xf32>
    %c4 = arith.constant 4 : index
    %c0_70 = arith.constant 0 : index
    %c0_71 = arith.constant 0 : index
    %99 = vector.load %arg6[%c4, %c0_70, %c0_71] : memref<6x32x32xf32, #tpu.memory_space<vmem>>, vector<1x32x32xf32>
    %100 = vector.shape_cast %99 : vector<1x32x32xf32> to vector<32x32xf32>
    %cst_72 = arith.constant dense<0.000000e+00> : vector<1x32xf32>
    %101 = tpu.matmul %98, %100, %cst_72 {dimension_numbers = #tpu.dot_dimension_numbers<[1], [0], [0], [1], [0, 0, 1, 1], [], []>} : vector<1x32xf32>, vector<32x32xf32>, vector<1x32xf32> -> vector<1x32xf32>
    %102 = arith.addf %97, %101 : vector<1x32xf32>
    %103 = vector.extract_strided_slice %88 {offsets = [4, 0], sizes = [1, 32], strides = [1, 1]} : vector<20x32xf32> to vector<1x32xf32>
    %c5 = arith.constant 5 : index
    %c0_73 = arith.constant 0 : index
    %c0_74 = arith.constant 0 : index
    %104 = vector.load %arg6[%c5, %c0_73, %c0_74] : memref<6x32x32xf32, #tpu.memory_space<vmem>>, vector<1x32x32xf32>
    %105 = vector.shape_cast %104 : vector<1x32x32xf32> to vector<32x32xf32>
    %cst_75 = arith.constant dense<0.000000e+00> : vector<1x32xf32>
    %106 = tpu.matmul %103, %105, %cst_75 {dimension_numbers = #tpu.dot_dimension_numbers<[1], [0], [0], [1], [0, 0, 1, 1], [], []>} : vector<1x32xf32>, vector<32x32xf32>, vector<1x32xf32> -> vector<1x32xf32>
    %107 = arith.addf %102, %106 : vector<1x32xf32>
    %108 = math.tanh %107 : vector<1x32xf32>
    %109 = arith.negf %107 : vector<1x32xf32>
    %110 = math.exp %109 : vector<1x32xf32>
    %cst_76 = arith.constant 1.000000e+00 : f32
    %111 = vector.broadcast %cst_76 : f32 to vector<1x32xf32>
    %112 = arith.addf %111, %110 : vector<1x32xf32>
    %113 = arith.divf %111, %112 : vector<1x32xf32>
    %114 = arith.mulf %108, %113 : vector<1x32xf32>
    %c1_77 = arith.constant 1 : index
    %c0_78 = arith.constant 0 : index
    %c0_79 = arith.constant 0 : index
    %115 = vector.load %arg10[%c1_77, %c0_78, %c0_79] : memref<2x32x128xf32, #tpu.memory_space<vmem>>, vector<1x32x128xf32>
    %116 = vector.shape_cast %115 : vector<1x32x128xf32> to vector<32x128xf32>
    %cst_80 = arith.constant dense<0.000000e+00> : vector<1x128xf32>
    %117 = tpu.matmul %114, %116, %cst_80 {dimension_numbers = #tpu.dot_dimension_numbers<[1], [0], [0], [1], [0, 0, 1, 1], [], []>} : vector<1x32xf32>, vector<32x128xf32>, vector<1x128xf32> -> vector<1x128xf32>
    %c1_81 = arith.constant 1 : index
    %c0_82 = arith.constant 0 : index
    %c0_83 = arith.constant 0 : index
    %118 = vector.load %arg11[%c1_81, %c0_82, %c0_83] : memref<2x1x128xf32, #tpu.memory_space<vmem>>, vector<1x1x128xf32>
    %119 = vector.shape_cast %118 : vector<1x1x128xf32> to vector<1x128xf32>
    %120 = arith.addf %117, %119 : vector<1x128xf32>
    %121 = arith.addf %79, %120 : vector<1x128xf32>
    %cst_84 = arith.constant 0.000000e+00 : f32
    %122 = vector.broadcast %cst_84 : f32 to vector<1x128xf32>
    %123 = arith.maximumf %121, %122 : vector<1x128xf32>
    %c0_85 = arith.constant 0 : index
    %c0_86 = arith.constant 0 : index
    %124 = vector.load %arg12[%c0_85, %c0_86] : memref<128x128xf32, #tpu.memory_space<vmem>>, vector<128x128xf32>
    %cst_87 = arith.constant dense<0.000000e+00> : vector<1x128xf32>
    %125 = tpu.matmul %123, %124, %cst_87 {dimension_numbers = #tpu.dot_dimension_numbers<[1], [0], [0], [1], [0, 0, 1, 1], [], []>} : vector<1x128xf32>, vector<128x128xf32>, vector<1x128xf32> -> vector<1x128xf32>
    %c0_88 = arith.constant 0 : index
    %c0_89 = arith.constant 0 : index
    %126 = vector.load %arg13[%c0_88, %c0_89] : memref<1x128xf32, #tpu.memory_space<vmem>>, vector<1x128xf32>
    %127 = arith.addf %125, %126 : vector<1x128xf32>
    %cst_90 = arith.constant 0.000000e+00 : f32
    %128 = vector.broadcast %cst_90 : f32 to vector<1x128xf32>
    %129 = arith.maximumf %127, %128 : vector<1x128xf32>
    %c0_91 = arith.constant 0 : index
    %c0_92 = arith.constant 0 : index
    %130 = vector.load %arg14[%c0_91, %c0_92] : memref<128x256xf32, #tpu.memory_space<vmem>>, vector<128x256xf32>
    %cst_93 = arith.constant dense<0.000000e+00> : vector<1x256xf32>
    %131 = tpu.matmul %129, %130, %cst_93 {dimension_numbers = #tpu.dot_dimension_numbers<[1], [0], [0], [1], [0, 0, 1, 1], [], []>} : vector<1x128xf32>, vector<128x256xf32>, vector<1x256xf32> -> vector<1x256xf32>
    %c0_94 = arith.constant 0 : index
    %c0_95 = arith.constant 0 : index
    %132 = vector.load %arg15[%c0_94, %c0_95] : memref<1x256xf32, #tpu.memory_space<vmem>>, vector<1x256xf32>
    %133 = arith.addf %131, %132 : vector<1x256xf32>
    %cst_96 = arith.constant dense<0xFF800000> : vector<1xf32>
    %134 = vector.multi_reduction <maximumf>, %133, %cst_96 [1] : vector<1x256xf32> to vector<1xf32>
    %135 = vector.shape_cast %134 : vector<1xf32> to vector<1x1xf32>
    %136 = vector.broadcast %135 : vector<1x1xf32> to vector<1x256xf32>
    %137 = arith.subf %133, %136 : vector<1x256xf32>
    %138 = math.exp %137 : vector<1x256xf32>
    %cst_97 = arith.constant dense<0.000000e+00> : vector<1xf32>
    %139 = vector.multi_reduction <add>, %138, %cst_97 [1] : vector<1x256xf32> to vector<1xf32>
    %140 = vector.shape_cast %139 : vector<1xf32> to vector<1x1xf32>
    %141 = vector.broadcast %140 : vector<1x1xf32> to vector<1x256xf32>
    %142 = arith.divf %138, %141 : vector<1x256xf32>
    %c0_98 = arith.constant 0 : index
    %c0_99 = arith.constant 0 : index
    %c0_100 = arith.constant 0 : index
    %143 = vector.load %arg16[%c0_98, %c0_99, %c0_100] : memref<1x1x256xf32, #tpu.memory_space<vmem>>, vector<1x1x256xf32>
    %144 = vector.shape_cast %143 : vector<1x1x256xf32> to vector<1x256xf32>
    %145 = vector.shape_cast %142 : vector<1x256xf32> to vector<1x1x256xf32>
    tpu.vector_store %arg16[%c0_98, %c0_99, %c0_100], %145 {strides = array<i32>} : memref<1x1x256xf32, #tpu.memory_space<vmem>>, vector<1x1x256xf32>,
    return
  }
  func.func @transform_0(%arg0: i32) -> (i32, i32, i32) {
    %c0_i32 = arith.constant 0 : i32
    %c0_i32_0 = arith.constant 0 : i32
    %c0_i32_1 = arith.constant 0 : i32
    return %arg0, %c0_i32, %c0_i32_0 : i32, i32, i32
  }
  func.func @transform_1(%arg0: i32) -> (i32, i32, i32) {
    %c0_i32 = arith.constant 0 : i32
    %c0_i32_0 = arith.constant 0 : i32
    %c0_i32_1 = arith.constant 0 : i32
    %c0_i32_2 = arith.constant 0 : i32
    return %c0_i32, %c0_i32_0, %c0_i32_1 : i32, i32, i32
  }
  func.func @transform_2(%arg0: i32) -> (i32, i32) {
    %c0_i32 = arith.constant 0 : i32
    %c0_i32_0 = arith.constant 0 : i32
    %c0_i32_1 = arith.constant 0 : i32
    return %c0_i32, %c0_i32_0 : i32, i32
  }
  func.func @transform_3(%arg0: i32) -> (i32, i32, i32) {
    %c0_i32 = arith.constant 0 : i32
    %c0_i32_0 = arith.constant 0 : i32
    %c0_i32_1 = arith.constant 0 : i32
    %c0_i32_2 = arith.constant 0 : i32
    return %c0_i32, %c0_i32_0, %c0_i32_1 : i32, i32, i32
  }
  func.func @transform_4(%arg0: i32) -> (i32, i32) {
    %c0_i32 = arith.constant 0 : i32
    %c0_i32_0 = arith.constant 0 : i32
    %c0_i32_1 = arith.constant 0 : i32
    return %c0_i32, %c0_i32_0 : i32, i32
  }
  func.func @transform_5(%arg0: i32) -> (i32, i32, i32) {
    %c0_i32 = arith.constant 0 : i32
    %c0_i32_0 = arith.constant 0 : i32
    %c0_i32_1 = arith.constant 0 : i32
    %c0_i32_2 = arith.constant 0 : i32
    return %c0_i32, %c0_i32_0, %c0_i32_1 : i32, i32, i32
  }
  func.func @transform_6(%arg0: i32) -> (i32, i32, i32) {
    %c0_i32 = arith.constant 0 : i32
    %c0_i32_0 = arith.constant 0 : i32
    %c0_i32_1 = arith.constant 0 : i32
    %c0_i32_2 = arith.constant 0 : i32
    return %c0_i32, %c0_i32_0, %c0_i32_1 : i32, i32, i32
  }
  func.func @transform_7(%arg0: i32) -> (i32, i32, i32) {
    %c0_i32 = arith.constant 0 : i32
    %c0_i32_0 = arith.constant 0 : i32
    %c0_i32_1 = arith.constant 0 : i32
    %c0_i32_2 = arith.constant 0 : i32
    return %c0_i32, %c0_i32_0, %c0_i32_1 : i32, i32, i32
  }
  func.func @transform_8(%arg0: i32) -> (i32, i32, i32) {
    %c0_i32 = arith.constant 0 : i32
    %c0_i32_0 = arith.constant 0 : i32
    %c0_i32_1 = arith.constant 0 : i32
    %c0_i32_2 = arith.constant 0 : i32
    return %c0_i32, %c0_i32_0, %c0_i32_1 : i32, i32, i32
  }
  func.func @transform_9(%arg0: i32) -> (i32, i32, i32) {
    %c0_i32 = arith.constant 0 : i32
    %c0_i32_0 = arith.constant 0 : i32
    %c0_i32_1 = arith.constant 0 : i32
    %c0_i32_2 = arith.constant 0 : i32
    return %c0_i32, %c0_i32_0, %c0_i32_1 : i32, i32, i32
  }
  func.func @transform_10(%arg0: i32) -> (i32, i32, i32) {
    %c0_i32 = arith.constant 0 : i32
    %c0_i32_0 = arith.constant 0 : i32
    %c0_i32_1 = arith.constant 0 : i32
    %c0_i32_2 = arith.constant 0 : i32
    return %c0_i32, %c0_i32_0, %c0_i32_1 : i32, i32, i32
  }
  func.func @transform_11(%arg0: i32) -> (i32, i32) {
    %c0_i32 = arith.constant 0 : i32
    %c0_i32_0 = arith.constant 0 : i32
    %c0_i32_1 = arith.constant 0 : i32
    return %c0_i32, %c0_i32_0 : i32, i32
  }
  func.func @transform_12(%arg0: i32) -> (i32, i32) {
    %c0_i32 = arith.constant 0 : i32
    %c0_i32_0 = arith.constant 0 : i32
    %c0_i32_1 = arith.constant 0 : i32
    return %c0_i32, %c0_i32_0 : i32, i32
  }
  func.func @transform_13(%arg0: i32) -> (i32, i32) {
    %c0_i32 = arith.constant 0 : i32
    %c0_i32_0 = arith.constant 0 : i32
    %c0_i32_1 = arith.constant 0 : i32
    return %c0_i32, %c0_i32_0 : i32, i32
  }
  func.func @transform_14(%arg0: i32) -> (i32, i32) {
    %c0_i32 = arith.constant 0 : i32
    %c0_i32_0 = arith.constant 0 : i32
    %c0_i32_1 = arith.constant 0 : i32
    return %c0_i32, %c0_i32_0 : i32, i32
  }
  func.func @transform_15(%arg0: i32) -> (i32, i32, i32) {
    %c0_i32 = arith.constant 0 : i32
    %c0_i32_0 = arith.constant 0 : i32
    %c0_i32_1 = arith.constant 0 : i32
    return %arg0, %c0_i32, %c0_i32_0 : i32, i32, i32
  }
}

</mosaic_0001>

<bundles_post_ra>
// kernel: tpu_custom_call.1
= control target key start
LH: loop header
LB: loop body
LE: loop exit
PB: predicated region body
PF: predicated region fallthrough
CT: control target
= control target key end

     0   :  { %20 = vsyncpa [#allocation3], 0  ;;  %s4354_s0 = inlined_call_operand.vmem [shape: f32[2,24,256], index: 0, kind: input, shape index: {}]   ;;  %s4355_s1 = inlined_call_operand.vmem [shape: f32[3,256,32], index: 1, kind: input, shape index: {}]   ;;  %s4356_s2 = inlined_call_operand.vmem [shape: f32[1,32], index: 2, kind: input, shape index: {}]   ;;  %s4357_s3 = inlined_call_operand.vmem [shape: f32[3,32,32], index: 3, kind: input, shape index: {}]   ;;  %s4358_s4 = inlined_call_operand.vmem [shape: f32[1,32], index: 4, kind: input, shape index: {}]   ;;  %s4359_s5 = inlined_call_operand.vmem [shape: f32[6,32,32], index: 5, kind: input, shape index: {}]   ;;  %s4360_s6 = inlined_call_operand.vmem [shape: f32[2,1,32], index: 6, kind: input, shape index: {}]   ;;  %s4361_s7 = inlined_call_operand.vmem [shape: f32[2,32,32], index: 7, kind: input, shape index: {}]   ;;  %s4362_s8 = inlined_call_operand.vmem [shape: f32[2,1,32], index: 8, kind: input, shape index: {}]   ;;  %s4363_s9 = inlined_call_operand.vmem [shape: f32[2,32,128], index: 9, kind: input, shape index: {}]   ;;  %s4364_s10 = inlined_call_operand.vmem [shape: f32[2,1,128], index: 10, kind: input, shape index: {}]   ;;  %s4365_s11 = inlined_call_operand.vmem [shape: f32[128,128], index: 11, kind: input, shape index: {}]   ;;  %s4366_s12 = inlined_call_operand.vmem [shape: f32[1,128], index: 12, kind: input, shape index: {}]   ;;  %s4367_s13 = inlined_call_operand.vmem [shape: f32[128,256], index: 13, kind: input, shape index: {}]   ;;  %s4368_s14 = inlined_call_operand.vmem [shape: f32[1,256], index: 14, kind: input, shape index: {}]   ;;  %s4369_s15 = inlined_call_operand.hbm [shape: f32[2,1,256], index: 15, kind: output, shape index: {}]  }
   0x1   :  { %22 = vsyncpa [#allocation3 + $0x1], 0  ;;  %s3439_s18 = smov 0   ;;  %s3441_s19 = smov 0  }
   0x2   :  { %s3443_s20 = smov 0   ;;  %s3445_s21 = smov 0  }
   0x3 LB: > { %4376 = sst [smem:[#allocation5_spill]] %s3340_s18  ;;  %s3460_s22 = sadd.s32 4294967295, %s3352_s21   ;;  %s3352_s21 = sphi %s3445_s21, %s4389_s21   ;;  %s3348_s20 = sphi %s3443_s20, %s4391_s20   ;;  %s3344_s19 = sphi %s3441_s19, %s4393_s19   ;;  %s3340_s18 = sphi %s3439_s18, %s4392_s18  }
   0x4   : > { %4377 = sst [smem:[#allocation6_spill]] %s3348_s20  ;;  %s2385_s23 = sadd.s32 4294967294, %s3352_s21  }
   0x5   : > { %4378 = sst [smem:[#allocation7_spill]] %s3352_s21  ;;  %s3464_s24 = sadd.s32 1, %s3352_s21  }
   0x6   : > { %4379 = sst [smem:[#allocation8_spill]] %s3464_s24  ;;  %s355_s25 = sadd.s32 1, %s3348_s20 }
   0x7   : > { %s352_s26 = ssub.s32 %s3352_s21, %s3464_s24  ;;  %p365_p0 = scmp.ne.s32.totalorder %s3348_s20, %s3344_s19 }
   0x8   : > { %p353_p1 = scmp.eq.s32.totalorder %s352_s26, 0  ;;  %p366_p2 = scmp.eq.s32.totalorder %s3460_s22, 1 }
   0x9   : > { %p371_p3 = scmp.ne.s32.totalorder %s3344_s19, %s3340_s18  ;;  %p372_p4 = scmp.eq.s32.totalorder %s2385_s23, 1 }
   0xa   : > { %s3475_s27 = scalar_select %p353_p1, %s3348_s20, %s355_s25  }
   0xb   : > { %p3477_p5 = por %p366_p2, %p365_p0  ;;  %p3481_p6 = por %p372_p4, %p371_p3 }
   0xc   : > { %4380 = sst [smem:[#allocation9_spill]] %s3475_s27  ;;  %p2388_p7 = scmp.ge.s32.totalorder %s3352_s21, 1 }
   0xd   : > { %s4382_s29 = scalar_select %p3481_p6, 1, 0 }
   0xe   : > { %p440_p8 = scmp.lt.s32.totalorder %s3352_s21, 3 }
   0xf   : > { %4383 = sst [smem:[#allocation10_spill]] %s4382_s29 }
  0x10   : > { %p441_p9 = pnand %p2388_p7, %p440_p8 }
  0x11   : > { %v548_v0 = vld [vmem:[%s4355_s1 + $0x80] sm:$0xff] (!%p441_p9)  ;;  %v549_v1 = vld [vmem:[%s4355_s1 + $0x88] sm:$0xff] (!%p441_p9)  ;;  %v550_v11 = vld [vmem:[%s4355_s1 + $0x90] sm:$0xff] (!%p441_p9)  ;;  %p488_p10 = scmp.lt.s32.totalorder (!%p441_p9), %s3460_s22, 1  ;;  %vm505_vm0 = vcmask (!%p441_p9), 1041408   ;;  %vm682_vm2 = vcmask (!%p441_p9), 1046528  }
  0x12   : > { %444 = sbr.rel (%p441_p9) target bundleno = 2273 (0x8e1), region = 80  ;;  %v532_v2 = vld [vmem:[%s4355_s1] sm:$0xff] (!%p441_p9)  ;;  %v2956_v3 = vpack.c.bf16 (!%p441_p9), %v549_v1, %v548_v0  ;;  %v533_v4 = vld [vmem:[%s4355_s1 + $0x8] sm:$0xff] (!%p441_p9)  ;;  %v551_v13 = vld [vmem:[%s4355_s1 + $0x98] sm:$0xff] (!%p441_p9)  ;;  %vm815_vm3 = vcmask (!%p441_p9), 1045504   ;;  %vm3355_vm4 = vmmov (!%p441_p9), 0  }
  0x13   : > { %v2412_v5 = vld [vmem:[%s4355_s1 + $0x180] sm:$0xff] (!%p441_p9)  ;;  %v2413_v6 = vld [vmem:[%s4355_s1 + $0x188] sm:$0xff] (!%p441_p9)  ;;  %v2958_v7 = vpack.c.bf16 (!%p441_p9), %v533_v4, %v532_v2  ;;  %v534_v14 = vld [vmem:[%s4355_s1 + $0x10] sm:$0xff] (!%p441_p9)  ;;  %v2960_v16 = vpack.c.bf16 (!%p441_p9), %v551_v13, %v550_v11  ;;  %vm941_vm5 = vcmask (!%p441_p9), 261120   ;;  %vm2268_vm6 = vcmask (!%p441_p9), 1040384   ;;  %s485_s16 = sand.u32 (!%p441_p9), 1, %s3344_s19  }
  0x14   : > { %v2988_v8 = vpack.c.bf16 (!%p441_p9), %v2413_v6, %v2412_v5  ;;  %v2396_v9 = vld [vmem:[%s4355_s1 + $0x100] sm:$0xff] (!%p441_p9)  ;;  %v2397_v10 = vld [vmem:[%s4355_s1 + $0x108] sm:$0xff] (!%p441_p9)  ;;  %2957 = vmatprep.subr.bf16.mxu0 (!%p441_p9), %v2956_v3  ;;  %v535_v15 = vld [vmem:[%s4355_s1 + $0x18] sm:$0xff] (!%p441_p9)  ;;  %s2532_s21 = sshll.u32 (!%p441_p9), %s3460_s22, 5 }
  0x15   : > { %v2990_v12 = vpack.c.bf16 (!%p441_p9), %v2397_v10, %v2396_v9  ;;  %2959 = vmatpush3.bf16.msra.mxu0 (!%p441_p9), %v2958_v7  ;;  %v2962_v17 = vpack.c.bf16 (!%p441_p9), %v535_v15, %v534_v14  ;;  %v2414_v18 = vld [vmem:[%s4355_s1 + $0x190] sm:$0xff] (!%p441_p9)  ;;  %v2415_v19 = vld [vmem:[%s4355_s1 + $0x198] sm:$0xff] (!%p441_p9)  ;;  %v552_v23 = vld [vmem:[%s4355_s1 + $0xa0] sm:$0xff] (!%p441_p9)  ;;  %s4312_s29 = scalar_lea.hbm (!%p441_p9), %s4369_s15, %s2532_s21 }
  0x16   : > { %2989 = vmatprep.subr.bf16.mxu1 (!%p441_p9), %v2988_v8  ;;  %v2398_v20 = vld [vmem:[%s4355_s1 + $0x110] sm:$0xff] (!%p441_p9)  ;;  %v2992_v21 = vpack.c.bf16 (!%p441_p9), %v2415_v19, %v2414_v18  ;;  %v2399_v22 = vld [vmem:[%s4355_s1 + $0x118] sm:$0xff] (!%p441_p9)  ;;  %v553_v24 = vld [vmem:[%s4355_s1 + $0xa8] sm:$0xff] (!%p441_p9)  ;;  %2961 = vmatprep.subr.bf16.mxu0 (!%p441_p9), %v2960_v16 }
  0x17   : > { %2991 = vmatpush3.bf16.msra.mxu1 (!%p441_p9), %v2990_v12  ;;  %v2994_v25 = vpack.c.bf16 (!%p441_p9), %v2399_v22, %v2398_v20  ;;  %v2964_v26 = vpack.c.bf16 (!%p441_p9), %v553_v24, %v552_v23  ;;  %v536_v27 = vld [vmem:[%s4355_s1 + $0x20] sm:$0xff] (!%p441_p9)  ;;  %v537_v28 = vld [vmem:[%s4355_s1 + $0x28] sm:$0xff] (!%p441_p9)  ;;  %v554_v35 = vld [vmem:[%s4355_s1 + $0xb0] sm:$0xff] (!%p441_p9) }
  0x18   : > { %v2416_v29 = vld [vmem:[%s4355_s1 + $0x1a0] sm:$0xff] (!%p441_p9)  ;;  %2993 = vmatprep.subr.bf16.mxu1 (!%p441_p9), %v2992_v21  ;;  %v2417_v30 = vld [vmem:[%s4355_s1 + $0x1a8] sm:$0xff] (!%p441_p9)  ;;  %v2966_v33 = vpack.c.bf16 (!%p441_p9), %v537_v28, %v536_v27  ;;  %v555_v36 = vld [vmem:[%s4355_s1 + $0xb8] sm:$0xff] (!%p441_p9) }
  0x19   : > { %v2400_v31 = vld [vmem:[%s4355_s1 + $0x120] sm:$0xff]  ;;  %v2401_v32 = vld [vmem:[%s4355_s1 + $0x128] sm:$0xff]  ;;  %2963 = vmatpush3.bf16.msra.mxu0 %v2962_v17  ;;  %v2996_v34 = vpack.c.bf16 %v2417_v30, %v2416_v29  ;;  %v538_v37 = vld [vmem:[%s4355_s1 + $0x30] sm:$0xff]  ;;  %v2968_v39 = vpack.c.bf16 %v555_v36, %v554_v35  ;;  %s3581_s20 = scalar_select %p488_p10, %s3460_s22, 1 }
  0x1a   : > { %2965 = vmatprep.subr.bf16.mxu0 %v2964_v26  ;;  %v2998_v38 = vpack.c.bf16 %v2401_v32, %v2400_v31  ;;  %v539_v40 = vld [vmem:[%s4355_s1 + $0x38] sm:$0xff]  ;;  %v2418_v41 = vld [vmem:[%s4355_s1 + $0x1b0] sm:$0xff]  ;;  %v556_v46 = vld [vmem:[%s4355_s1 + $0xc0] sm:$0xff]  ;;  %s3358_s22 = smov [#allocation2]  }
  0x1b   : > { %2995 = vmatpush3.bf16.msra.mxu1 %v2994_v25  ;;  %v2419_v42 = vld [vmem:[%s4355_s1 + $0x1b8] sm:$0xff]  ;;  %v2402_v44 = vld [vmem:[%s4355_s1 + $0x130] sm:$0xff]  ;;  %v557_v47 = vld [vmem:[%s4355_s1 + $0xc8] sm:$0xff]  ;;  %v2970_v48 = vpack.c.bf16 %v539_v40, %v538_v37  ;;  %s3216_s23 = smul.u32 48, %s3581_s20  ;;  %s2389_s20 = sshll.u32 %s485_s16, 1 }
  0x1c   : > { %2997 = vmatprep.subr.bf16.mxu1 %v2996_v34  ;;  %v3000_v43 = vpack.c.bf16 %v2419_v42, %v2418_v41  ;;  %v2403_v45 = vld [vmem:[%s4355_s1 + $0x138] sm:$0xff]  ;;  %v2420_v49 = vld [vmem:[%s4355_s1 + $0x1c0] sm:$0xff]  ;;  %v2421_v50 = vld [vmem:[%s4355_s1 + $0x1c8] sm:$0xff]  ;;  %v2972_v52 = vpack.c.bf16 %v557_v47, %v556_v46  ;;  %s487_s17 = scalar_lea.vmem [#allocation2], %s2389_s20  ;;  %s3294_s18 = sshll.u32 %s3358_s22, 4  ;;  %s3295_s18 = int_to_ptr.vmem [resolvable:$false] %s3294_s18 }
  0x1d   : > { %2967 = vmatpush3.bf16.msra.mxu0 %v2966_v33  ;;  %v3002_v51 = vpack.c.bf16 %v2403_v45, %v2402_v44  ;;  %v540_v53 = vld [vmem:[%s4355_s1 + $0x40] sm:$0xff]  ;;  %v541_v54 = vld [vmem:[%s4355_s1 + $0x48] sm:$0xff]  ;;  %v3004_v56 = vpack.c.bf16 %v2421_v50, %v2420_v49  ;;  %v558_v58 = vld [vmem:[%s4355_s1 + $0xd0] sm:$0xff]  ;;  %s3638_s30 = scalar_lea.vmem %s4354_s0, %s3216_s23  ;;  %s2326_s25 = sshll.u32 %s487_s17, 4  ;;  %s4314_s25 = int_to_ptr.vmem [resolvable:$true] %s2326_s25 }
  0x1e   : > { %2969 = vmatprep.subr.bf16.mxu0 %v2968_v39  ;;  %v2404_v55 = vld [vmem:[%s4355_s1 + $0x140] sm:$0xff]  ;;  %v2405_v57 = vld [vmem:[%s4355_s1 + $0x148] sm:$0xff]  ;;  %v559_v59 = vld [vmem:[%s4355_s1 + $0xd8] sm:$0xff]  ;;  %v2974_v62 = vpack.c.bf16 %v541_v54, %v540_v53  ;;  %s3290_s23 = scalar_lea.vmem %s4314_s25, 32  ;;  %s3296_s26 = scalar_lea.vmem %s3295_s18, 64 }
  0x1f   : > { %2999 = vmatpush3.bf16.msra.mxu1 %v2998_v38  ;;  %v2422_v60 = vld [vmem:[%s4355_s1 + $0x1d0] sm:$0xff]  ;;  %v2423_v61 = vld [vmem:[%s4355_s1 + $0x1d8] sm:$0xff]  ;;  %v3006_v63 = vpack.c.bf16 %v2405_v57, %v2404_v55  ;;  %v2976_v0 = vpack.c.bf16 %v559_v59, %v558_v58  ;;  %v560_v6 = vld [vmem:[%s4355_s1 + $0xe0] sm:$0xff]  ;;  %p3291_p11 = scmp.ne.s32.totalorder %s4314_s25, %s3290_s23  ;;  %p3297_p0 = scmp.lt.s32.totalorder %s4314_s25, %s3295_s18 }
  0x20   : > { %3001 = vmatprep.subr.bf16.mxu1 %v3000_v43  ;;  %v542_v1 = vld [vmem:[%s4355_s1 + $0x50] sm:$0xff]  ;;  %v543_v2 = vld [vmem:[%s4355_s1 + $0x58] sm:$0xff]  ;;  %v3008_v4 = vpack.c.bf16 %v2423_v61, %v2422_v60  ;;  %v561_v7 = vld [vmem:[%s4355_s1 + $0xe8] sm:$0xff]  ;;  %p3298_p1 = scmp.lt.s32.totalorder %s3296_s26, %s3290_s23 }
  0x21   : > { %2971 = vmatpush3.bf16.msra.mxu0 %v2970_v48  ;;  %v2406_v3 = vld [vmem:[%s4355_s1 + $0x150] sm:$0xff]  ;;  %v2407_v5 = vld [vmem:[%s4355_s1 + $0x158] sm:$0xff]  ;;  %v2424_v8 = vld [vmem:[%s4355_s1 + $0x1e0] sm:$0xff]  ;;  %v2978_v10 = vpack.c.bf16 %v543_v2, %v542_v1  ;;  %v2980_v15 = vpack.c.bf16 %v561_v7, %v560_v6  ;;  %p3292_p12 = pnand %p3291_p11, %p3477_p5 }
  0x22   : > { %2973 = vmatprep.subr.bf16.mxu0 %v2972_v52  ;;  %v2425_v9 = vld [vmem:[%s4355_s1 + $0x1e8] sm:$0xff]  ;;  %v544_v11 = vld [vmem:[%s4355_s1 + $0x60] sm:$0xff]  ;;  %v3010_v14 = vpack.c.bf16 %v2407_v5, %v2406_v3  ;;  %vm3669_vm1 = vmneg %vm505_vm0  ;;  %p3299_p2 = por %p3298_p1, %p3297_p0 }
  0x23   : > { %3003 = vmatpush3.bf16.msra.mxu1 %v3002_v51  ;;  %v545_v12 = vld [vmem:[%s4355_s1 + $0x68] sm:$0xff]  ;;  %v2408_v16 = vld [vmem:[%s4355_s1 + $0x160] sm:$0xff]  ;;  %v3012_v20 = vpack.c.bf16 %v2425_v9, %v2424_v8  ;;  %v562_v21 = vld [vmem:[%s4355_s1 + $0xf0] sm:$0xff]  ;;  %p3293_p13 = pneg %p3292_p12 }
  0x24   : > { %3005 = vmatprep.subr.bf16.mxu1 %v3004_v56  ;;  %v494_v13 = vld [vmem:[%s3638_s30 + $0x8] sm:$0xff]  ;;  %v563_v22 = vld [vmem:[%s4355_s1 + $0xf8] sm:$0xff]  ;;  %v493_v23 = vld [vmem:[%s3638_s30] sm:$0xff]  ;;  %v2982_v29 = vpack.c.bf16 %v545_v12, %v544_v11 }
  0x25   : > { %2975 = vmatpush3.bf16.msra.mxu0 %v2974_v62  ;;  %v2409_v17 = vld [vmem:[%s4355_s1 + $0x168] sm:$0xff]  ;;  %v507_v18 = vrot.slane %v494_v13, 6  ;;  %v2426_v24 = vld [vmem:[%s4355_s1 + $0x1f0] sm:$0xff]  ;;  %v2427_v25 = vld [vmem:[%s4355_s1 + $0x1f8] sm:$0xff]  ;;  %v506_v26 = vrot.slane %v493_v23, 6  ;;  %v2984_v34 = vpack.c.bf16 %v563_v22, %v562_v21  ;;  %p3300_p3 = pnand %p3299_p2, %p3293_p13 }
  0x26   : > { %2977 = vmatprep.subr.bf16.mxu0 %v2976_v0  ;;  %v496_v27 = vld [vmem:[%s3638_s30 + $0x18] sm:$0xff]  ;;  %v546_v30 = vld [vmem:[%s4355_s1 + $0x70] sm:$0xff]  ;;  %v3014_v33 = vpack.c.bf16 %v2409_v17, %v2408_v16  ;;  %v3016_v40 = vpack.c.bf16 %v2427_v25, %v2426_v24  ;;  %v2444_v41 = vld [vmem:[%s4355_s1 + $0x280] sm:$0xff] }
  0x27   : > { %3007 = vmatpush3.bf16.msra.mxu1 %v3006_v63  ;;  %2393 = vmatprep.mubr.msk.f32.mxu0 %vm3669_vm1, %v507_v18  ;;  %v3690_v28 = vsel %vm505_vm0, 0.0, %v507_v18  ;;  %v510_v31 = vrot.slane %v496_v27, 6  ;;  %v495_v32 = vld [vmem:[%s3638_s30 + $0x10] sm:$0xff]  ;;  %v547_v35 = vld [vmem:[%s4355_s1 + $0x78] sm:$0xff]  ;;  %v2445_v42 = vld [vmem:[%s4355_s1 + $0x288] sm:$0xff]  ;;  %v3716_v44 = vsel %vm505_vm0, 0.0, %v506_v26 }
  0x28   : > { %3009 = vmatprep.subr.bf16.mxu1 %v3008_v4  ;;  %v2410_v36 = vld [vmem:[%s4355_s1 + $0x170] sm:$0xff]  ;;  %v2411_v37 = vld [vmem:[%s4355_s1 + $0x178] sm:$0xff]  ;;  %v686_v38 = vrot.slane %v3690_v28, 1  ;;  %v508_v39 = vrot.slane %v495_v32, 6  ;;  %v2986_v47 = vpack.c.bf16 %v547_v35, %v546_v30  ;;  %v3020_v49 = vpack.c.bf16 %v2445_v42, %v2444_v41  ;;  %v2428_v51 = vld [vmem:[%s4355_s1 + $0x200] sm:$0xff] }
  0x29   : > { %2979 = vmatpush3.bf16.msra.mxu0 %v2978_v10  ;;  %v3713_v43 = vsel %vm505_vm0, %v507_v18, %v510_v31  ;;  %v3018_v48 = vpack.c.bf16 %v2411_v37, %v2410_v36  ;;  %v2429_v52 = vld [vmem:[%s4355_s1 + $0x208] sm:$0xff]  ;;  %v683_v53 = vrot.slane %v3716_v44, 1  ;;  %v2446_v55 = vld [vmem:[%s4355_s1 + $0x290] sm:$0xff]  ;;  %v2447_v56 = vld [vmem:[%s4355_s1 + $0x298] sm:$0xff]  ;;  %v819_v16 = vrot.slane %v3690_v28, 2 }
  0x2a   : > { %2981 = vmatprep.subr.bf16.mxu0 %v2980_v15  ;;  %v687_v45 = vrot.slane %v3713_v43, 1  ;;  %v3720_v46 = vsel %vm505_vm0, %v506_v26, %v508_v39  ;;  %v3738_v57 = vld [vmem:[%s3638_s30 + $0x28] sm:$0xff]  ;;  %v3022_v58 = vpack.c.bf16 %v2429_v52, %v2428_v51  ;;  %v3742_v60 = vld [vmem:[%s3638_s30 + $0x20] sm:$0xff]  ;;  %v3024_v62 = vpack.c.bf16 %v2447_v56, %v2446_v55  ;;  %v2430_v63 = vld [vmem:[%s4355_s1 + $0x210] sm:$0xff]  ;;  %s2312_s30 = scalar_lea.sflag [#allocation3], %s485_s16 }
  0x2b   : > { %3011 = vmatpush3.bf16.msra.mxu1 %v3010_v14  ;;  %v684_v54 = vrot.slane %v3720_v46, 1  ;;  %v514_v59 = vrot.slane %v3738_v57, 6  ;;  %v2431_v0 = vld [vmem:[%s4355_s1 + $0x218] sm:$0xff]  ;;  %v512_v1 = vrot.slane %v3742_v60, 6  ;;  %v2448_v2 = vld [vmem:[%s4355_s1 + $0x2a0] sm:$0xff]  ;;  %v2449_v3 = vld [vmem:[%s4355_s1 + $0x2a8] sm:$0xff] }
  0x2c   : > { %3013 = vmatprep.subr.bf16.mxu1 %v3012_v20  ;;  %v688_v50 = vsel %vm682_vm2, %v686_v38, %v687_v45  ;;  %v3026_v7 = vpack.c.bf16 %v2431_v0, %v2430_v63  ;;  %v3028_v9 = vpack.c.bf16 %v2449_v3, %v2448_v2  ;;  %v2432_v10 = vld [vmem:[%s4355_s1 + $0x220] sm:$0xff]  ;;  %v2433_v11 = vld [vmem:[%s4355_s1 + $0x228] sm:$0xff]  ;;  %v2450_v13 = vld [vmem:[%s4355_s1 + $0x2b0] sm:$0xff]  ;;  %v820_v17 = vrot.slane %v3713_v43, 2 }
  0x2d   : > { %2983 = vmatpush3.bf16.msra.mxu0 %v2982_v29  ;;  %763 = vmatprep.mubr.f32.mxu1 %v688_v50  ;;  %v685_v61 = vsel %vm682_vm2, %v683_v53, %v684_v54  ;;  %v3761_v4 = vsel %vm505_vm0, %v510_v31, %v514_v59  ;;  %v3769_v6 = vsel %vm505_vm0, %v508_v39, %v512_v1  ;;  %v2451_v14 = vld [vmem:[%s4355_s1 + $0x2b8] sm:$0xff]  ;;  %v2434_v20 = vld [vmem:[%s4355_s1 + $0x230] sm:$0xff]  ;;  %v2452_v22 = vld [vmem:[%s4355_s1 + $0x2c0] sm:$0xff]  ;;  %v817_v51 = vrot.slane %v3720_v46, 2 }
  0x2e   : > { %2985 = vmatprep.subr.bf16.mxu0 %v2984_v34  ;;  %v691_v5 = vrot.slane %v3761_v4, 1  ;;  %v689_v8 = vrot.slane %v3769_v6, 1  ;;  %v3030_v18 = vpack.c.bf16 %v2433_v11, %v2432_v10  ;;  %v3032_v19 = vpack.c.bf16 %v2451_v14, %v2450_v13  ;;  %v2435_v21 = vld [vmem:[%s4355_s1 + $0x238] sm:$0xff]  ;;  %v2453_v23 = vld [vmem:[%s4355_s1 + $0x2c8] sm:$0xff]  ;;  %v2436_v27 = vld [vmem:[%s4355_s1 + $0x240] sm:$0xff] }
  0x2f   : > { %3015 = vmatpush3.bf16.msra.mxu1 %v3014_v33  ;;  %v821_v24 = vsel %vm815_vm3, %v819_v16, %v820_v17  ;;  %v3034_v25 = vpack.c.bf16 %v2435_v21, %v2434_v20  ;;  %v2437_v28 = vld [vmem:[%s4355_s1 + $0x248] sm:$0xff]  ;;  %v2454_v29 = vld [vmem:[%s4355_s1 + $0x2d0] sm:$0xff]  ;;  %v2455_v30 = vld [vmem:[%s4355_s1 + $0x2d8] sm:$0xff]  ;;  %v824_v52 = vrot.slane %v3761_v4, 2  ;;  %v828_v56 = vrot.slane %v514_v59, 2 }
  0x30   : > { %3017 = vmatprep.subr.bf16.mxu1 %v3016_v40  ;;  %v692_v12 = vsel %vm682_vm2, %v687_v45, %v691_v5  ;;  %v690_v15 = vsel %vm682_vm2, %v684_v54, %v689_v8  ;;  %v3038_v31 = vpack.c.bf16 %v2437_v28, %v2436_v27  ;;  %v3040_v32 = vpack.c.bf16 %v2455_v30, %v2454_v29  ;;  %v2438_v33 = vld [vmem:[%s4355_s1 + $0x250] sm:$0xff]  ;;  %v2439_v34 = vld [vmem:[%s4355_s1 + $0x258] sm:$0xff]  ;;  %v2456_v35 = vld [vmem:[%s4355_s1 + $0x2e0] sm:$0xff] }
  0x31   : > { %2987 = vmatpush3.bf16.msra.mxu0 %v2986_v47  ;;  %v2457_v36 = vld [vmem:[%s4355_s1 + $0x2e8] sm:$0xff]  ;;  %v3042_v37 = vpack.c.bf16 %v2439_v34, %v2438_v33  ;;  %v2440_v39 = vld [vmem:[%s4355_s1 + $0x260] sm:$0xff]  ;;  %v2458_v41 = vld [vmem:[%s4355_s1 + $0x2f0] sm:$0xff]  ;;  %v822_v54 = vrot.slane %v3769_v6, 2  ;;  %v825_v55 = vsel %vm815_vm3, %v820_v17, %v824_v52  ;;  %v3354_v63 = vmov 0.0|0.0  }
  0x32   : > { %3021 = vmatprep.subr.bf16.mxu0 %v3020_v49  ;;  %v3044_v38 = vpack.c.bf16 %v2457_v36, %v2456_v35  ;;  %v2441_v40 = vld [vmem:[%s4355_s1 + $0x268] sm:$0xff]  ;;  %v2459_v42 = vld [vmem:[%s4355_s1 + $0x2f8] sm:$0xff]  ;;  %v2442_v47 = vld [vmem:[%s4355_s1 + $0x270] sm:$0xff]  ;;  %v816_v49 = vrot.slane %v3716_v44, 2 }
  0x33   : > { %3019 = vmatpush3.bf16.msra.mxu1 %v3018_v48  ;;  %v3048_v45 = vpack.c.bf16 %v2459_v42, %v2458_v41  ;;  %v2443_v48 = vld [vmem:[%s4355_s1 + $0x278] sm:$0xff]  ;;  %v823_v44 = vsel %vm815_vm3, %v817_v51, %v822_v54  ;;  %v938_v57 = vld [vmem:[%s4357_s3 + $0x8] sm:$0xff]  ;;  %v939_v60 = vld [vmem:[%s4357_s3 + $0x10] sm:$0xff] }
  0x34   : > { %2395 = vmatmul.mubr.msk.f32.vlgmr.msra.gmra.mrb[0].mxu0 %vm3669_vm1, %v506_v26  ;;  %v3036_v26 = vpack.c.bf16 %v2453_v23, %v2452_v22  ;;  %v3050_v50 = vpack.c.bf16 %v2443_v48, %v2442_v47  ;;  %v818_v53 = vsel %vm815_vm3, %v816_v49, %v817_v51  ;;  %3058 = vmatprep.subr.bf16.mxu1 %v3354_v63  ;;  %v940_v0 = vld [vmem:[%s4357_s3 + $0x18] sm:$0xff]  ;;  %v2464_v2 = vld [vmem:[%s4357_s3 + $0x20] sm:$0xff]  ;;  %v2465_v3 = vld [vmem:[%s4357_s3 + $0x28] sm:$0xff] }
  0x35   : > { %3023 = vmatpush3.bf16.msra.mxu0 %v3022_v58  ;;  %633 = vmatprep.mubr.f32.mxu0 %v3713_v43  ;;  %v3046_v43 = vpack.c.bf16 %v2441_v40, %v2440_v39  ;;  %v829_v58 = vsel %vm815_vm3, %v824_v52, %v828_v56  ;;  %v2391_v10 = vld [vmem:[%s4356_s2] ss:$0 sm:$0xff]  ;;  %v2472_v49 = vld [vmem:[%s4357_s3 + $0x48] sm:$0xff] }
  0x36   : > { %764 = vmatmul.mubr.f32.vlgmr.msra.gmra.mrb[0].mxu1 %v685_v61  ;;  %3025 = vmatprep.subr.bf16.mxu0 %v3024_v62  ;;  %v937_v62 = vld [vmem:[%s4357_s3] sm:$0xff] }
  0x37   : > { %768 = vmatprep.mubr.f32.mxu1 %v692_v12  ;;  %v3053_v59 = vpack.c.bf16 %v938_v57, %v937_v62  ;;  %v2471_v48 = vld [vmem:[%s4357_s3 + $0x40] sm:$0xff]  ;;  %v2474_v62 = vld [vmem:[%s4357_s3 + $0x58] sm:$0xff] }
  0x38   : > { %634 = vmatmul.mubr.f32.gmra.mrb[2].mxu0 %v3720_v46  ;;  %v826_v46 = vrot.slane %v512_v1, 2  ;;  %v3056_v1 = vpack.c.bf16 %v940_v0, %v939_v60 }
  0x39   : > { %3027 = vmatpush3.bf16.msra.mxu0 %v3026_v7  ;;  %638 = vmatprep.mubr.f32.mxu0 %v3761_v4  ;;  %v3059_v4 = vpack.c.bf16 %v2465_v3, %v2464_v2  ;;  %v2467_v7 = vld [vmem:[%s4357_s3 + $0x38] sm:$0xff] }
  0x3a   : > { %769 = vmatmul.mubr.f32.gmra.mrb[2].mxu1 %v690_v15  ;;  %3029 = vmatprep.subr.bf16.mxu0 %v3028_v9  ;;  %v827_v61 = vsel %vm815_vm3, %v822_v54, %v826_v46  ;;  %v3065_v54 = vpack.c.bf16 %v2472_v49, %v2471_v48 }
  0x3b   : > { %773 = vmatprep.mubr.f32.mxu1 %v691_v5  ;;  %v3356_v5 = vmov 0.0   ;;  %3060 = vmatpush3.bf16.msra.mxu1 %v3059_v4 }
  0x3c   : > { %639 = vmatmul.mubr.f32.gmra.mrb[4].mxu0 %v3769_v6  ;;  %3061 = vmatprep.subr.bf16.mxu1 %v3354_v63  ;;  %v2466_v6 = vld [vmem:[%s4357_s3 + $0x30] sm:$0xff] }
  0x3d   : > { %3031 = vmatpush3.bf16.msra.mxu0 %v3030_v18  ;;  %900 = vmatprep.mubr.f32.mxu0 %v821_v24 }
  0x3e   : > { %774 = vmatmul.mubr.f32.gmra.mrb[4].mxu1 %v689_v8  ;;  %3033 = vmatprep.subr.bf16.mxu0 %v3032_v19  ;;  %v3062_v8 = vpack.c.bf16 %v2467_v7, %v2466_v6  ;;  %v1238_v6 = vld [vmem:[%s4359_s5] sm:$0xff]  ;;  %v1239_v7 = vld [vmem:[%s4359_s5 + $0x8] sm:$0xff] }
  0x3f   : > { %2772 = vmatprep.mubr.msk.f32.mxu1 %vm3355_vm4, %v3356_v5 }
  0x40   : > { %3063 = vmatpush3.bf16.msra.mxu1 %v3062_v8  ;;  %v1240_v8 = vld [vmem:[%s4359_s5 + $0x10] sm:$0xff] }
  0x41   : > { %3035 = vmatpush3.bf16.msra.mxu0 %v3034_v25  ;;  %3064 = vmatprep.subr.bf16.mxu1 %v3354_v63 }
  0x42   : > { %3037 = vmatprep.subr.bf16.mxu0 %v3036_v26 }
  0x45   : > { %3039 = vmatpush3.bf16.msra.mxu0 %v3038_v31 }
  0x46   : > { %3041 = vmatprep.subr.bf16.mxu0 %v3040_v32 }
  0x49   : > { %3043 = vmatpush3.bf16.msra.mxu0 %v3042_v37 }
  0x4a   : > { %3045 = vmatprep.subr.bf16.mxu0 %v3044_v38 }
  0x4d   : > { %3047 = vmatpush3.bf16.msra.mxu0 %v3046_v43 }
  0x4e   : > { %3049 = vmatprep.subr.bf16.mxu0 %v3048_v45 }
  0x51   : > { %3051 = vmatpush3.bf16.msra.mxu0 %v3050_v50 }
  0x52   : > { %3052 = vmatprep.subr.bf16.mxu0 %v3354_v63 }
  0x54   : > { %901 = vmatmul.mubr.f32.vlgmr.msra.gmra.mrb[6].mxu0 %v818_v53 }
  0x55   : > { %905 = vmatprep.mubr.f32.mxu0 %v825_v55  ;;  %3054 = vmatpush3.bf16.msra.mxu0 %v3053_v59 }
  0x56   : > { %3055 = vmatprep.subr.bf16.mxu0 %v3354_v63 }
  0x58   : > { %906 = vmatmul.mubr.f32.gmra.mrb[8].mxu0 %v823_v44 }
  0x59   : > { %910 = vmatprep.mubr.f32.mxu0 %v829_v58  ;;  %3057 = vmatpush3.bf16.msra.mxu0 %v3056_v1 }
  0x5a   : > { %3070 = vmatprep.subr.bf16.mxu0 %v3354_v63 }
  0x5c   : > { %911 = vmatmul.mubr.f32.gmra.mrb[10].mxu0 %v827_v61  ;;  %v2473_v61 = vld [vmem:[%s4357_s3 + $0x50] sm:$0xff] }
  0x5d   : > { %2755 = vmatprep.mubr.msk.f32.mxu0 %vm3355_vm4, %v3356_v5  ;;  %v3068_v2 = vpack.c.bf16 %v2474_v62, %v2473_v61  ;;  %v2478_v62 = vld [vmem:[%s4360_s6] ss:$0 sm:$0xff] }
 0x107   : > { %v2565_v9 = vpop.f32.mrb[0].mxu0 }
 0x108   : > { %v2566_v11 = vpop.f32.mrb[1].mxu0 }
 0x109   : > { %v2606_v12 = vpop.f32.mrb[0].mxu1  ;;  %v2567_v13 = vadd.f32 %v2566_v11, %v2565_v9  ;;  %v3071_v9 = vpack.c.bf16 %v1239_v7, %v1238_v6 }
 0x10a   : > { %v2607_v14 = vpop.f32.mrb[1].mxu1 }
 0x10b   : > { %v2608_v15 = vadd.f32 %v2607_v14, %v2606_v12  ;;  %v644_v16 = vadd.f32 %v2567_v13, %v2391_v10  ;;  %v2568_v17 = vpop.f32.mrb[2].mxu0 }
 0x10c   : > { %v2569_v18 = vpop.f32.mrb[3].mxu0 }
 0x10d   : > { %v2609_v19 = vpop.f32.mrb[2].mxu1  ;;  %v779_v20 = vadd.f32 %v2608_v15, %v644_v16  ;;  %v2570_v21 = vadd.f32 %v2569_v18, %v2568_v17  ;;  %v2460_v18 = vld [vmem:[%s4358_s4] ss:$0 sm:$0xff] }
 0x10e   : > { %v2610_v22 = vpop.f32.mrb[3].mxu1 }
 0x10f   : > { %v2611_v23 = vadd.f32 %v2610_v22, %v2609_v19  ;;  %v645_v24 = vadd.f32 %v2570_v21, %v2391_v10  ;;  %v2571_v25 = vpop.f32.mrb[4].mxu0  ;;  %v2482_v19 = vld [vmem:[%s4359_s5 + $0x20] sm:$0xff] }
 0x110   : > { %v2572_v26 = vpop.f32.mrb[5].mxu0 }
 0x111   : > { %v2612_v27 = vpop.f32.mrb[4].mxu1  ;;  %v780_v28 = vadd.f32 %v2611_v23, %v645_v24  ;;  %v2573_v29 = vadd.f32 %v2572_v26, %v2571_v25  ;;  %v2484_v26 = vld [vmem:[%s4359_s5 + $0x30] sm:$0xff] }
 0x112   : > { %v2613_v30 = vpop.f32.mrb[5].mxu1 }
 0x113   : > { %v2614_v31 = vadd.f32 %v2613_v30, %v2612_v27  ;;  %v646_v32 = vadd.f32 %v2573_v29, %v2391_v10  ;;  %v1241_v10 = vld [vmem:[%s4359_s5 + $0x18] sm:$0xff] }
 0x114   : > { %v3074_v11 = vpack.c.bf16 %v1241_v10, %v1240_v8  ;;  %v2485_v27 = vld [vmem:[%s4359_s5 + $0x38] sm:$0xff] }
 0x115   : > { %v781_v33 = vadd.f32 %v2614_v31, %v646_v32  ;;  %v3080_v30 = vpack.c.bf16 %v2485_v27, %v2484_v26  ;;  %v2505_v26 = vld [vmem:[%s4359_s5 + $0x60] sm:$0xff]  ;;  %v2506_v27 = vld [vmem:[%s4359_s5 + $0x68] sm:$0xff] }
 0x127   : > { %v2647_v34 = vpop.f32.mrb[6].mxu0 }
 0x128   : > { %v2648_v35 = vpop.f32.mrb[7].mxu0 }
 0x129   : > { %v2649_v36 = vadd.f32 %v2648_v35, %v2647_v34 }
 0x12b   : > { %v916_v37 = vadd.f32 %v2649_v36, %v779_v20  ;;  %v2650_v38 = vpop.f32.mrb[8].mxu0  ;;  %v2483_v20 = vld [vmem:[%s4359_s5 + $0x28] sm:$0xff] }
 0x12c   : > { %v2651_v39 = vpop.f32.mrb[9].mxu0  ;;  %v3077_v23 = vpack.c.bf16 %v2483_v20, %v2482_v19 }
 0x12d   : > { %v922_v40 = vrot.slane %v916_v37, 6  ;;  %v2652_v41 = vadd.f32 %v2651_v39, %v2650_v38 }
 0x12f   : > { %v928_v42 = vsel %vm505_vm0, 0.0, %v922_v40  ;;  %v917_v43 = vadd.f32 %v2652_v41, %v780_v28  ;;  %v2653_v45 = vpop.f32.mrb[10].mxu0 }
 0x130   : > { %v2654_v47 = vpop.f32.mrb[11].mxu0  ;;  %2756 = vmatmul.mubr.msk.f32.vlgmr.msra.gmra.mrb[12].mxu0 %vm941_vm5, %v928_v42  ;;  %v1037_v55 = vrot.slane %v928_v42, 1  ;;  %v1136_v56 = vrot.slane %v928_v42, 2  ;;  %v2489_v42 = vld [vmem:[%s4359_s5 + $0x40] sm:$0xff] }
 0x131   : > { %v923_v50 = vrot.slane %v917_v43, 6  ;;  %v2655_v51 = vadd.f32 %v2654_v47, %v2653_v45  ;;  %2758 = vmatprep.mubr.msk.f32.mxu0 %vm3355_vm4, %v3356_v5  ;;  %3072 = vmatpush3.bf16.msra.mxu0 %v3071_v9  ;;  %v2490_v43 = vld [vmem:[%s4359_s5 + $0x48] sm:$0xff] }
 0x132   : > { %3073 = vmatprep.subr.bf16.mxu0 %v3354_v63  ;;  %v3083_v49 = vpack.c.bf16 %v2490_v43, %v2489_v42 }
 0x133   : > { %v918_v52 = vadd.f32 %v2655_v51, %v781_v33  ;;  %v924_v53 = vsel %vm505_vm0, %v922_v40, %v923_v50  ;;  %v2491_v51 = vld [vmem:[%s4359_s5 + $0x50] sm:$0xff] }
 0x134   : > { %2759 = vmatmul.mubr.msk.f32.gmra.mrb[14].mxu0 %vm941_vm5, %v924_v53  ;;  %v1038_v44 = vrot.slane %v924_v53, 1  ;;  %v1137_v46 = vrot.slane %v924_v53, 2 }
 0x135   : > { %v925_v58 = vrot.slane %v918_v52, 6  ;;  %2761 = vmatprep.mubr.msk.f32.mxu0 %vm3355_vm4, %v3356_v5  ;;  %3075 = vmatpush3.bf16.msra.mxu0 %v3074_v11  ;;  %v2492_v52 = vld [vmem:[%s4359_s5 + $0x58] sm:$0xff] }
 0x136   : > { %v1039_v57 = vsel %vm682_vm2, %v1037_v55, %v1038_v44  ;;  %v1138_v59 = vsel %vm815_vm3, %v1136_v56, %v1137_v46  ;;  %3076 = vmatprep.subr.bf16.mxu0 %v3354_v63  ;;  %v1556_v55 = vld [vmem:[%s4363_s9] sm:$0xff]  ;;  %v1557_v56 = vld [vmem:[%s4363_s9 + $0x8] sm:$0xff] }
 0x137   : > { %2773 = vmatmul.mubr.msk.f32.vlgmr.msra.gmra.mrb[6].mxu1 %vm941_vm5, %v1039_v57  ;;  %v926_v60 = vsel %vm505_vm0, %v923_v50, %v925_v58  ;;  %v1559_v58 = vld [vmem:[%s4363_s9 + $0x18] sm:$0xff] }
 0x138   : > { %3066 = vmatpush3.bf16.msra.mxu1 %v3065_v54  ;;  %2762 = vmatmul.mubr.msk.f32.gmra.mrb[16].mxu0 %vm941_vm5, %v926_v60  ;;  %v1040_v0 = vrot.slane %v926_v60, 1  ;;  %v1139_v1 = vrot.slane %v926_v60, 2  ;;  %v3086_v54 = vpack.c.bf16 %v2492_v52, %v2491_v51 }
 0x139   : > { %2775 = vmatprep.mubr.msk.f32.mxu1 %vm3355_vm4, %v3356_v5  ;;  %3067 = vmatprep.subr.bf16.mxu1 %v3354_v63 }
 0x13a   : > { %v1041_v3 = vsel %vm682_vm2, %v1038_v44, %v1040_v0  ;;  %v1140_v4 = vsel %vm815_vm3, %v1137_v46, %v1139_v1  ;;  %2806 = vmatprep.mubr.msk.f32.mxu0 %vm3355_vm4, %v3356_v5  ;;  %v3089_v44 = vpack.c.bf16 %v1557_v56, %v1556_v55  ;;  %v1558_v46 = vld [vmem:[%s4363_s9 + $0x10] sm:$0xff] }
 0x13b   : > { %2776 = vmatmul.mubr.msk.f32.gmra.mrb[8].mxu1 %vm941_vm5, %v1041_v3  ;;  %v3092_v61 = vpack.c.bf16 %v1559_v58, %v1558_v46  ;;  %v2517_v58 = vld [vmem:[%s4359_s5 + $0xb0] sm:$0xff] }
 0x13c   : > { %3069 = vmatpush3.bf16.msra.mxu1 %v3068_v2  ;;  %2778 = vmatprep.mubr.msk.f32.mxu1 %vm3355_vm4, %v3356_v5 }
 0x13d   : > { %3088 = vmatprep.subr.bf16.mxu1 %v3354_v63 }
 0x13f   : > { %2779 = vmatmul.mubr.msk.f32.gmra.mrb[10].mxu1 %vm941_vm5, %v1040_v0 }
 0x140   : > { %2789 = vmatprep.mubr.msk.f32.mxu1 %vm3355_vm4, %v3356_v5 }
 0x143   : > { %2790 = vmatmul.mubr.msk.f32.vlgmr.msra.gmra.mrb[6].mxu1 %vm941_vm5, %v1138_v59 }
 0x144   : > { %2792 = vmatprep.mubr.msk.f32.mxu1 %vm3355_vm4, %v3356_v5  ;;  %3090 = vmatpush3.bf16.msra.mxu1 %v3089_v44 }
 0x145   : > { %3091 = vmatprep.subr.bf16.mxu1 %v3354_v63 }
 0x147   : > { %2793 = vmatmul.mubr.msk.f32.gmra.mrb[8].mxu1 %vm941_vm5, %v1140_v4 }
 0x148   : > { %2795 = vmatprep.mubr.msk.f32.mxu1 %vm3355_vm4, %v3356_v5  ;;  %3093 = vmatpush3.bf16.msra.mxu1 %v3092_v61  ;;  %v2518_v61 = vld [vmem:[%s4359_s5 + $0xb8] sm:$0xff] }
 0x149   : > { %3094 = vmatprep.subr.bf16.mxu1 %v3354_v63 }
 0x14b   : > { %2796 = vmatmul.mubr.msk.f32.gmra.mrb[10].mxu1 %vm941_vm5, %v1139_v1 }
 0x14c   : > { %2857 = vmatprep.mubr.msk.f32.mxu1 %vm3355_vm4, %v3356_v5 }
 0x203   : > { %v1015_v12 = vpop.f32.mrb[12].mxu0 }
 0x204   : > { %v2757_v13 = vpop.f32.mrb[13].mxu0  ;;  %v1029_v21 = vadd.f32 %v2460_v18, %v1015_v12 }
 0x207   : > { %v1020_v14 = vpop.f32.mrb[14].mxu0 }
 0x208   : > { %v2760_v15 = vpop.f32.mrb[15].mxu0  ;;  %v1030_v28 = vadd.f32 %v2460_v18, %v1020_v14 }
 0x20b   : > { %v1025_v16 = vpop.f32.mrb[16].mxu0 }
 0x20c   : > { %v2763_v17 = vpop.f32.mrb[17].mxu0  ;;  %v1031_v33 = vadd.f32 %v2460_v18, %v1025_v16  ;;  %v1636_v16 = vld [vmem:[%s4361_s7] sm:$0xff] }
 0x20d   : > { %v1637_v17 = vld [vmem:[%s4361_s7 + $0x8] sm:$0xff] }
 0x216   : > { %v1213_v22 = vpop.f32.mrb[6].mxu1 }
 0x217   : > { %v3181_v24 = vadd.f32 %v1213_v22, %v1029_v21  ;;  %v2791_v25 = vpop.f32.mrb[7].mxu1  ;;  %v3095_v21 = vpack.c.bf16 %v1637_v17, %v1636_v16  ;;  %v2073_v17 = vld [vmem:[%s4365_s11 + $0x40] sm:$0xff] }
 0x219   : > { %2807 = vmatmul.mubr.msk.f32.vlgmr.msra.gmra.mrb[18].mxu0 %vm941_vm5, %v3181_v24  ;;  %v1339_v34 = vrot.slane %v3181_v24, 1  ;;  %v1438_v35 = vrot.slane %v3181_v24, 2  ;;  %v1639_v24 = vld [vmem:[%s4361_s7 + $0x18] sm:$0xff] }
 0x21a   : > { %3078 = vmatpush3.bf16.msra.mxu0 %v3077_v23  ;;  %v1218_v29 = vpop.f32.mrb[8].mxu1  ;;  %2809 = vmatprep.mubr.msk.f32.mxu0 %vm3355_vm4, %v3356_v5  ;;  %v1638_v23 = vld [vmem:[%s4361_s7 + $0x10] sm:$0xff] }
 0x21b   : > { %v3183_v31 = vadd.f32 %v1218_v29, %v1030_v28  ;;  %v2794_v32 = vpop.f32.mrb[9].mxu1  ;;  %3079 = vmatprep.subr.bf16.mxu0 %v3354_v63  ;;  %v3098_v25 = vpack.c.bf16 %v1639_v24, %v1638_v23  ;;  %v3101_v28 = vpack.c.bf16 %v2506_v27, %v2505_v26  ;;  %v2507_v29 = vld [vmem:[%s4359_s5 + $0x70] sm:$0xff]  ;;  %v2077_v23 = vld [vmem:[%s4365_s11 + $0x60] sm:$0xff]  ;;  %v2078_v24 = vld [vmem:[%s4365_s11 + $0x68] sm:$0xff] }
 0x21c   : > { %v2504_v26 = vld [vmem:[%s4360_s6 + $0x1] sm:$0x1] }
 0x21d   : > { %v1340_v36 = vrot.slane %v3183_v31, 1  ;;  %v1439_v37 = vrot.slane %v3183_v31, 2  ;;  %2810 = vmatmul.mubr.msk.f32.gmra.mrb[20].mxu0 %vm941_vm5, %v3183_v31 }
 0x21e   : > { %v1223_v38 = vpop.f32.mrb[10].mxu1  ;;  %3081 = vmatpush3.bf16.msra.mxu0 %v3080_v30  ;;  %2812 = vmatprep.mubr.msk.f32.mxu0 %vm3355_vm4, %v3356_v5  ;;  %v2508_v30 = vld [vmem:[%s4359_s5 + $0x78] sm:$0xff] }
 0x21f   : > { %v3185_v39 = vadd.f32 %v1223_v38, %v1031_v33  ;;  %v2797_v40 = vpop.f32.mrb[11].mxu1  ;;  %3082 = vmatprep.subr.bf16.mxu0 %v3354_v63  ;;  %v1341_v41 = vsel %vm682_vm2, %v1339_v34, %v1340_v36  ;;  %v3990_v45 = vsel %vm815_vm3, %v1438_v35, %v1439_v37  ;;  %v3104_v33 = vpack.c.bf16 %v2508_v30, %v2507_v29  ;;  %v2500_v38 = vld [vmem:[%s4362_s8] ss:$0 sm:$0xff] }
 0x220   : > { %v2511_v40 = vld [vmem:[%s4359_s5 + $0x88] sm:$0xff] }
 0x221   : > { %v1342_v47 = vrot.slane %v3185_v39, 1  ;;  %v1441_v48 = vrot.slane %v3185_v39, 2  ;;  %2813 = vmatmul.mubr.msk.f32.gmra.mrb[22].mxu0 %vm941_vm5, %v3185_v39  ;;  %v2510_v39 = vld [vmem:[%s4359_s5 + $0x80] sm:$0xff] }
 0x222   : > { %2823 = vmatprep.mubr.msk.f32.mxu0 %vm3355_vm4, %v3356_v5 }
 0x223   : > { %v1343_v50 = vsel %vm682_vm2, %v1340_v36, %v1342_v47  ;;  %v1442_v53 = vsel %vm815_vm3, %v1439_v37, %v1441_v48 }
 0x225   : > { %2824 = vmatmul.mubr.msk.f32.vlgmr.msra.gmra.mrb[18].mxu0 %vm941_vm5, %v1341_v41 }
 0x226   : > { %3084 = vmatpush3.bf16.msra.mxu0 %v3083_v49  ;;  %2826 = vmatprep.mubr.msk.f32.mxu0 %vm3355_vm4, %v3356_v5  ;;  %v2512_v49 = vld [vmem:[%s4359_s5 + $0x90] sm:$0xff] }
 0x227   : > { %3085 = vmatprep.subr.bf16.mxu0 %v3354_v63 }
 0x229   : > { %2827 = vmatmul.mubr.msk.f32.gmra.mrb[20].mxu0 %vm941_vm5, %v1343_v50  ;;  %v2513_v50 = vld [vmem:[%s4359_s5 + $0x98] sm:$0xff] }
 0x22a   : > { %3087 = vmatpush3.bf16.msra.mxu0 %v3086_v54  ;;  %2829 = vmatprep.mubr.msk.f32.mxu0 %vm3355_vm4, %v3356_v5  ;;  %v2516_v54 = vld [vmem:[%s4359_s5 + $0xa8] sm:$0xff] }
 0x22b   : > { %3124 = vmatprep.subr.bf16.mxu0 %v3354_v63 }
 0x22d   : > { %2830 = vmatmul.mubr.msk.f32.gmra.mrb[22].mxu0 %vm941_vm5, %v1342_v47  ;;  %v3107_v47 = vpack.c.bf16 %v2511_v40, %v2510_v39  ;;  %v2156_v39 = vld [vmem:[%s4367_s13 + $0x18] sm:$0xff] }
 0x22e   : > { %2840 = vmatprep.mubr.msk.f32.mxu0 %vm3355_vm4, %v3356_v5 }
 0x231   : > { %2841 = vmatmul.mubr.msk.f32.vlgmr.msra.gmra.mrb[18].mxu0 %vm941_vm5, %v3990_v45 }
 0x232   : > { %2843 = vmatprep.mubr.msk.f32.mxu0 %vm3355_vm4, %v3356_v5 }
 0x235   : > { %2844 = vmatmul.mubr.msk.f32.gmra.mrb[20].mxu0 %vm941_vm5, %v1442_v53  ;;  %v3110_v53 = vpack.c.bf16 %v2513_v50, %v2512_v49  ;;  %v2157_v49 = vld [vmem:[%s4367_s13 + $0x20] sm:$0xff]  ;;  %v2159_v50 = vld [vmem:[%s4367_s13 + $0x30] sm:$0xff] }
 0x236   : > { %2846 = vmatprep.mubr.msk.f32.mxu0 %vm3355_vm4, %v3356_v5 }
 0x239   : > { %2847 = vmatmul.mubr.msk.f32.gmra.mrb[22].mxu0 %vm941_vm5, %v1441_v48 }
 0x23a   : > { %2953 = vmatprep.mubr.msk.f32.mxu0 %vm3355_vm4, %v3356_v5 }
 0x304   : > { %v1515_v57 = vpop.f32.mrb[18].mxu0 }
 0x305   : > { %v3186_v59 = vadd.f32 %v2478_v62, %v1515_v57  ;;  %v2842_v60 = vpop.f32.mrb[19].mxu0 }
 0x306   : > { %v2522_v60 = vld [vmem:[%s4363_s9 + $0x28] sm:$0xff] }
 0x307   : > { %v2496_v0 = vmul.f32 -1.442695, %v3186_v59 }
 0x308   : > { %v1520_v1 = vpop.f32.mrb[20].mxu0 }
 0x309   : > { %3260 = vpow2.f32 %v2496_v0  ;;  %v3187_v2 = vadd.f32 %v2478_v62, %v1520_v1  ;;  %v2845_v3 = vpop.f32.mrb[21].mxu0  ;;  %v2523_v0 = vld [vmem:[%s4363_s9 + $0x30] sm:$0xff] }
 0x30b   : > { %v2497_v6 = vmul.f32 -1.442695, %v3187_v2 }
 0x30c   : > { %v1525_v4 = vpop.f32.mrb[22].mxu0 }
 0x30d   : > { %v3188_v7 = vadd.f32 %v2478_v62, %v1525_v4  ;;  %v2848_v8 = vpop.f32.mrb[23].mxu0  ;;  %3262 = vpow2.f32 %v2497_v6  ;;  %v3116_v62 = vpack.c.bf16 %v2518_v61, %v2517_v58  ;;  %v2065_v4 = vld [vmem:[%s4365_s11] sm:$0xff]  ;;  %v2066_v6 = vld [vmem:[%s4365_s11 + $0x8] sm:$0xff] }
 0x30e   : > { %3264 = vtanh.f32 %v3186_v59  ;;  %v2521_v59 = vld [vmem:[%s4363_s9 + $0x20] sm:$0xff]  ;;  %v3125_v8 = vpack.c.bf16 %v2066_v6, %v2065_v4  ;;  %v2176_v4 = vld [vmem:[%s4367_s13 + $0xb8] sm:$0xff] }
 0x30f   : > { %v2498_v9 = vmul.f32 -1.442695, %v3188_v7  ;;  %v3119_v1 = vpack.c.bf16 %v2522_v60, %v2521_v59  ;;  %v2165_v61 = vld [vmem:[%s4367_s13 + $0x60] sm:$0xff]  ;;  %v2172_v59 = vld [vmem:[%s4367_s13 + $0x98] sm:$0xff] }
 0x310   : > { %3126 = vmatpush3.bf16.msra.mxu0 %v3125_v8  ;;  %v2173_v8 = vld [vmem:[%s4367_s13 + $0xa0] sm:$0xff] }
 0x311   : > { %3266 = vpow2.f32 %v2498_v9  ;;  %v2068_v9 = vld [vmem:[%s4365_s11 + $0x18] sm:$0xff]  ;;  %3127 = vmatprep.subr.bf16.mxu0 %v3354_v63 }
 0x313   : > { %v3261_v10 = vpop.eup %3260 }
 0x314   : > { %v1544_v11 = vadd.f32 1.0, %v3261_v10 }
 0x316   : > { %3268 = vrcp.f32 %v1544_v11  ;;  %v2069_v11 = vld [vmem:[%s4365_s11 + $0x20] sm:$0xff] }
 0x317   : > { %v3263_v12 = vpop.eup %3262 }
 0x318   : > { %v3265_v13 = vpop.eup %3264  ;;  %v1545_v14 = vadd.f32 1.0, %v3263_v12  ;;  %v2070_v12 = vld [vmem:[%s4365_s11 + $0x28] sm:$0xff] }
 0x31a   : > { %3270 = vrcp.f32 %v1545_v14  ;;  %v2071_v14 = vld [vmem:[%s4365_s11 + $0x30] sm:$0xff] }
 0x31b   : > { %v3267_v15 = vpop.eup %3266  ;;  %3272 = vtanh.f32 %v3187_v2  ;;  %v2524_v2 = vld [vmem:[%s4363_s9 + $0x38] sm:$0xff] }
 0x31c   : > { %v1546_v20 = vadd.f32 1.0, %v3267_v15  ;;  %v3122_v3 = vpack.c.bf16 %v2524_v2, %v2523_v0  ;;  %v2072_v15 = vld [vmem:[%s4365_s11 + $0x38] sm:$0xff]  ;;  %v2171_v2 = vld [vmem:[%s4367_s13 + $0x90] sm:$0xff] }
 0x31d   : > { %v3134_v16 = vpack.c.bf16 %v2072_v15, %v2071_v14  ;;  %v2177_v14 = vld [vmem:[%s4367_s13 + $0xc0] sm:$0xff]  ;;  %v2179_v15 = vld [vmem:[%s4367_s13 + $0xd0] sm:$0xff] }
 0x31e   : > { %3274 = vrcp.f32 %v1546_v20  ;;  %v2075_v20 = vld [vmem:[%s4365_s11 + $0x50] sm:$0xff] }
 0x31f   : > { %3276 = vtanh.f32 %v3188_v7  ;;  %v2067_v7 = vld [vmem:[%s4365_s11 + $0x10] sm:$0xff] }
 0x320   : > { %v3269_v18 = vpop.eup %3268  ;;  %v3128_v10 = vpack.c.bf16 %v2068_v9, %v2067_v7  ;;  %v2175_v9 = vld [vmem:[%s4367_s13 + $0xb0] sm:$0xff] }
 0x321   : > { %v1553_v19 = vmul.f32 %v3269_v18, %v3265_v13  ;;  %v3131_v13 = vpack.c.bf16 %v2070_v12, %v2069_v11  ;;  %v2074_v18 = vld [vmem:[%s4365_s11 + $0x48] sm:$0xff]  ;;  %v2180_v11 = vld [vmem:[%s4367_s13 + $0xd8] sm:$0xff]  ;;  %v3170_v12 = vpack.c.bf16 %v2175_v9, %v2173_v8 }
 0x322   : > { %3129 = vmatpush3.bf16.msra.mxu0 %v3128_v10  ;;  %v2178_v10 = vld [vmem:[%s4367_s13 + $0xc8] sm:$0xff] }
 0x323   : > { %v1562_v22 = vrot.slane %v1553_v19, 4  ;;  %3130 = vmatprep.subr.bf16.mxu0 %v3354_v63 }
 0x324   : > { %v3271_v31 = vpop.eup %3270 }
 0x325   : > { %2858 = vmatmul.mubr.msk.f32.vlgmr.msra.gmra.mrb[12].mxu1 %vm941_vm5, %v1562_v22  ;;  %v3273_v32 = vpop.eup %3272 }
 0x326   : > { %3096 = vmatpush3.bf16.msra.mxu1 %v3095_v21  ;;  %2868 = vmatprep.mubr.msk.f32.mxu1 %vm3355_vm4, %v3356_v5  ;;  %v1554_v34 = vmul.f32 %v3273_v32, %v3271_v31  ;;  %v2076_v21 = vld [vmem:[%s4365_s11 + $0x58] sm:$0xff] }
 0x327   : > { %3097 = vmatprep.subr.bf16.mxu1 %v3354_v63  ;;  %3132 = vmatpush3.bf16.msra.mxu0 %v3131_v13  ;;  %v3140_v22 = vpack.c.bf16 %v2076_v21, %v2075_v20  ;;  %v3172_v13 = vpack.c.bf16 %v2180_v11, %v2178_v10 }
 0x328   : > { %v3275_v35 = vpop.eup %3274  ;;  %3133 = vmatprep.subr.bf16.mxu0 %v3354_v63 }
 0x329   : > { %v3277_v36 = vpop.eup %3276 }
 0x32a   : > { %3099 = vmatpush3.bf16.msra.mxu1 %v3098_v25  ;;  %v1555_v37 = vmul.f32 %v3277_v36, %v3275_v35  ;;  %v3143_v25 = vpack.c.bf16 %v2078_v24, %v2077_v23  ;;  %v2080_v36 = vld [vmem:[%s4365_s11 + $0x78] sm:$0xff]  ;;  %v2182_v24 = vld [vmem:[%s4367_s13 + $0xe8] sm:$0xff] }
 0x32b   : > { %3100 = vmatprep.subr.bf16.mxu1 %v3354_v63  ;;  %3135 = vmatpush3.bf16.msra.mxu0 %v3134_v16  ;;  %v3174_v16 = vpack.c.bf16 %v2179_v15, %v2177_v14 }
 0x32c   : > { %3136 = vmatprep.subr.bf16.mxu0 %v3354_v63 }
 0x32d   : > { %2869 = vmatmul.mubr.msk.f32.vlgmr.msra.gmra.mrb[14].mxu1 %vm941_vm5, %v1553_v19  ;;  %v3137_v19 = vpack.c.bf16 %v2074_v18, %v2073_v17  ;;  %v1560_v17 = vld [vmem:[%s4364_s10] sm:$0x1]  ;;  %v2525_v18 = vld [vmem:[%s4364_s10 + $0x1] sm:$0x1] }
 0x32e   : > { %2871 = vmatprep.mubr.msk.f32.mxu1 %vm3355_vm4, %v3356_v5  ;;  %3102 = vmatpush3.bf16.msra.mxu1 %v3101_v28 }
 0x32f   : > { %3103 = vmatprep.subr.bf16.mxu1 %v3354_v63  ;;  %3138 = vmatpush3.bf16.msra.mxu0 %v3137_v19  ;;  %v3189_v19 = vadd.f32 %v2525_v18, %v1560_v17 }
 0x330   : > { %3139 = vmatprep.subr.bf16.mxu0 %v3354_v63 }
 0x331   : > { %2872 = vmatmul.mubr.msk.f32.gmra.mrb[16].mxu1 %vm941_vm5, %v1554_v34 }
 0x332   : > { %2874 = vmatprep.mubr.msk.f32.mxu1 %vm3355_vm4, %v3356_v5  ;;  %3105 = vmatpush3.bf16.msra.mxu1 %v3104_v33 }
 0x333   : > { %3106 = vmatprep.subr.bf16.mxu1 %v3354_v63  ;;  %3141 = vmatpush3.bf16.msra.mxu0 %v3140_v22 }
 0x334   : > { %3142 = vmatprep.subr.bf16.mxu0 %v3354_v63 }
 0x335   : > { %2875 = vmatmul.mubr.msk.f32.gmra.mrb[18].mxu1 %vm941_vm5, %v1555_v37 }
 0x336   : > { %2885 = vmatprep.mubr.msk.f32.mxu1 %vm3355_vm4, %v3356_v5 }
 0x337   : > { %3144 = vmatpush3.bf16.msra.mxu0 %v3143_v25  ;;  %v2184_v25 = vld [vmem:[%s4367_s13 + $0xf8] sm:$0xff] }
 0x338   : > { %3145 = vmatprep.subr.bf16.mxu0 %v3354_v63 }
 0x400   : > { %v1721_v41 = vpop.f32.mrb[14].mxu1 }
 0x401   : > { %v1722_v42 = vadd.f32 %v2500_v38, %v1721_v41  ;;  %v2870_v43 = vpop.f32.mrb[15].mxu1  ;;  %v2154_v38 = vld [vmem:[%s4367_s13 + $0x8] sm:$0xff]  ;;  %v2155_v41 = vld [vmem:[%s4367_s13 + $0x10] sm:$0xff] }
 0x402   : > { %v3148_v40 = vpack.c.bf16 %v2156_v39, %v2154_v38  ;;  %v2160_v43 = vld [vmem:[%s4367_s13 + $0x38] sm:$0xff] }
 0x403   : > { %v1734_v48 = vadd.f32 %v1722_v42, %v3990_v45  ;;  %v2515_v45 = vld [vmem:[%s4359_s5 + $0xa0] sm:$0xff]  ;;  %v2158_v42 = vld [vmem:[%s4367_s13 + $0x28] sm:$0xff] }
 0x404   : > { %v1726_v51 = vpop.f32.mrb[16].mxu1  ;;  %v3113_v44 = vpack.c.bf16 %v2516_v54, %v2515_v45  ;;  %v2161_v54 = vld [vmem:[%s4367_s13 + $0x40] sm:$0xff] }
 0x405   : > { %v2873_v52 = vpop.f32.mrb[17].mxu1  ;;  %2886 = vmatmul.mubr.msk.f32.vlgmr.msra.gmra.mrb[20].mxu1 %vm941_vm5, %v1734_v48  ;;  %v1822_v46 = vrot.slane %v1734_v48, 2  ;;  %v1901_v57 = vrot.slane %v1734_v48, 4  ;;  %v3152_v48 = vpack.c.bf16 %v2160_v43, %v2158_v42  ;;  %v2162_v51 = vld [vmem:[%s4367_s13 + $0x48] sm:$0xff] }
 0x406   : > { %3108 = vmatpush3.bf16.msra.mxu1 %v3107_v47  ;;  %2896 = vmatprep.mubr.msk.f32.mxu1 %vm3355_vm4, %v3356_v5  ;;  %v2164_v52 = vld [vmem:[%s4367_s13 + $0x58] sm:$0xff] }
 0x407   : > { %3109 = vmatprep.subr.bf16.mxu1 %v3354_v63  ;;  %v3156_v45 = vpack.c.bf16 %v2164_v52, %v2162_v51 }
 0x408   : > { %v1730_v55 = vpop.f32.mrb[18].mxu1 }
 0x409   : > { %v2876_v56 = vpop.f32.mrb[19].mxu1  ;;  %v2163_v55 = vld [vmem:[%s4367_s13 + $0x50] sm:$0xff] }
 0x40a   : > { %3111 = vmatpush3.bf16.msra.mxu1 %v3110_v53  ;;  %v3154_v53 = vpack.c.bf16 %v2159_v50, %v2157_v49  ;;  %v2166_v56 = vld [vmem:[%s4367_s13 + $0x68] sm:$0xff] }
 0x40b   : > { %3112 = vmatprep.subr.bf16.mxu1 %v3354_v63 }
 0x40d   : > { %2897 = vmatmul.mubr.msk.f32.vlgmr.msra.gmra.mrb[20].mxu1 %vm941_vm5, %v1822_v46  ;;  %v3158_v46 = vpack.c.bf16 %v2163_v55, %v2161_v54 }
 0x40e   : > { %3114 = vmatpush3.bf16.msra.mxu1 %v3113_v44  ;;  %2907 = vmatprep.mubr.msk.f32.mxu1 %vm3355_vm4, %v3356_v5  ;;  %v2168_v44 = vld [vmem:[%s4367_s13 + $0x78] sm:$0xff] }
 0x40f   : > { %3115 = vmatprep.subr.bf16.mxu1 %v3354_v63  ;;  %v3160_v58 = vpack.c.bf16 %v2168_v44, %v2166_v56 }
 0x412   : > { %3117 = vmatpush3.bf16.msra.mxu1 %v3116_v62  ;;  %v2167_v62 = vld [vmem:[%s4367_s13 + $0x70] sm:$0xff] }
 0x413   : > { %3118 = vmatprep.subr.bf16.mxu1 %v3354_v63  ;;  %v3162_v60 = vpack.c.bf16 %v2167_v62, %v2165_v61  ;;  %v3357_v61 = vmov 1966171168  }
 0x414   : > { %v2292_v62 = vunpack.c.l.s4 %v3357_v61 }
 0x415   : > { %2908 = vmatmul.mubr.msk.f32.vlgmr.msra.gmra.mrb[20].mxu1 %vm941_vm5, %v1901_v57  ;;  %v2170_v57 = vld [vmem:[%s4367_s13 + $0x88] sm:$0xff] }
 0x416   : > { %2918 = vmatprep.mubr.msk.f32.mxu1 %vm3355_vm4, %v3356_v5  ;;  %3120 = vmatpush3.bf16.msra.mxu1 %v3119_v1  ;;  %v3164_v0 = vpack.c.bf16 %v2172_v59, %v2170_v57  ;;  %v2169_v1 = vld [vmem:[%s4367_s13 + $0x80] sm:$0xff]  ;;  %v2293_v57 = vunpack.c.0.s8 %v2292_v62 }
 0x417   : > { %3121 = vmatprep.subr.bf16.mxu1 %v3354_v63  ;;  %v2079_v63 = vld [vmem:[%s4365_s11 + $0x70] sm:$0xff]  ;;  %v3166_v6 = vpack.c.bf16 %v2171_v2, %v2169_v1 }
 0x418   : > { %v3146_v37 = vpack.c.bf16 %v2080_v36, %v2079_v63 }
 0x41a   : > { %3123 = vmatpush3.bf16.msra.mxu1 %v3122_v3  ;;  %3147 = vmatpush3.bf16.msra.mxu0 %v3146_v37  ;;  %v2174_v3 = vld [vmem:[%s4367_s13 + $0xa8] sm:$0xff]  ;;  %v2185_v37 = vld [vmem:[%s4368_s14] sm:$0x3] }
 0x41b   : > { %3149 = vmatprep.subr.bf16.mxu1 %v3148_v40  ;;  %v3168_v7 = vpack.c.bf16 %v2176_v4, %v2174_v3 }
 0x4e8   : > { %v1970_v27 = vpop.f32.mrb[20].mxu1 }
 0x4e9   : > { %v3191_v28 = vadd.f32 %v2504_v26, %v1970_v27  ;;  %v2909_v29 = vpop.f32.mrb[21].mxu1  ;;  %v3176_v26 = vpack.c.bf16 %v2184_v25, %v2182_v24  ;;  %v2181_v27 = vld [vmem:[%s4367_s13 + $0xe0] sm:$0xff] }
 0x4eb   : > { %v2520_v30 = vmul.f32 -1.442695, %v3191_v28 }
 0x4ed   : > { %3278 = vpow2.f32 %v2520_v30  ;;  %v2081_v30 = vld [vmem:[%s4366_s12] sm:$0x1] }
 0x4ee   : > { %3280 = vtanh.f32 %v3191_v28  ;;  %v2183_v28 = vld [vmem:[%s4367_s13 + $0xf0] sm:$0xff] }
 0x4ef   : > { %v3178_v29 = vpack.c.bf16 %v2183_v28, %v2181_v27 }
 0x4f7   : > { %v3279_v31 = vpop.eup %3278 }
 0x4f8   : > { %v1979_v32 = vadd.f32 1.0, %v3279_v31  ;;  %v3281_v33 = vpop.eup %3280 }
 0x4fa   : > { %3282 = vrcp.f32 %v1979_v32 }
 0x504   : > { %v3283_v34 = vpop.eup %3282 }
 0x505   : > { %v1982_v35 = vmul.f32 %v3283_v34, %v3281_v33 }
 0x507   : > { %2919 = vmatmul.mubr.msk.f32.vlgmr.msra.gmra.mrb[12].mxu1 %vm941_vm5, %v1982_v35  ;;  %v2187_v35 = vlaneseq }
 0x508   : > { %2261 = vmatprep.mubr.f32.mxu1 %v3356_v5  ;;  %v2153_v5 = vld [vmem:[%s4367_s13] sm:$0xff] }
 0x509   : > { %v3150_v47 = vpack.c.bf16 %v2155_v41, %v2153_v5  ;;  %v2188_v63 = vshrl.u32 %v2187_v35, 7  ;;  %vm2308_vm7 = vcmp.lt.s32.totalorder %v2187_v35, 256 }
 0x50b   : > { %3151 = vmatpush1.bf16.msra.mxu1 %v3150_v47  ;;  %v2189_v36 = vsub.s32 0, %v2188_v63  ;;  %v2193_v38 = vsub.s32 1, %v2188_v63  ;;  %v2296_v1 = vsub.s32 %v2293_v57, %v2188_v63 }
 0x50c   : > { %3153 = vmatprep.subr.bf16.mxu1 %v3152_v48 }
 0x50d   : > { %v2190_v39 = vrot.slane %v2185_v37, %v2189_v36  ;;  %v2194_v5 = vrot.slane %v2185_v37, %v2193_v38 }
 0x50f   : > { %3155 = vmatpush1.bf16.msra.mxu1 %v3154_v53 }
 0x510   : > { %3157 = vmatprep.subr.bf16.mxu1 %v3156_v45 }
 0x513   : > { %3159 = vmatpush1.bf16.msra.mxu1 %v3158_v46 }
 0x514   : > { %3161 = vmatprep.subr.bf16.mxu1 %v3160_v58 }
 0x517   : > { %3163 = vmatpush1.bf16.msra.mxu1 %v3162_v60 }
 0x518   : > { %3165 = vmatprep.subr.bf16.mxu1 %v3164_v0 }
 0x51b   : > { %3167 = vmatpush1.bf16.msra.mxu1 %v3166_v6 }
 0x51c   : > { %3169 = vmatprep.subr.bf16.mxu1 %v3168_v7 }
 0x51f   : > { %3171 = vmatpush1.bf16.msra.mxu1 %v3170_v12 }
 0x520   : > { %3173 = vmatprep.subr.bf16.mxu1 %v3172_v13 }
 0x523   : > { %3175 = vmatpush1.bf16.msra.mxu1 %v3174_v16 }
 0x524   : > { %3177 = vmatprep.subr.bf16.mxu1 %v3176_v26 }
 0x527   : > { %3179 = vmatpush1.bf16.msra.mxu1 %v3178_v29 }
 0x5da   : > { %v2059_v20 = vpop.f32.mrb[12].mxu1 }
 0x5db   : > { %v3190_v21 = vadd.f32 %v3189_v19, %v2059_v20  ;;  %v2920_v22 = vpop.f32.mrb[13].mxu1 }
 0x5dd   : > { %v2064_v23 = vmax.f32 %v3190_v21, 0.0 }
 0x5df   : > { %2954 = vmatmul.mubr.f32.vlgmr.msra.gmra.mrb[24].mxu0 %v2064_v23 }
 0x6b2   : > { %v2148_v31 = vpop.f32.mrb[24].mxu0 }
 0x6b3   : > { %v2149_v32 = vadd.f32 %v2148_v31, %v2081_v30  ;;  %v2955_v33 = vpop.f32.mrb[25].mxu0 }
 0x6b5   : > { %v2152_v34 = vmax.f32 %v2149_v32, 0.0 }
 0x6b7   : > { %2262 = vmatmul.mubr.f32.vlgmr.msra.gmra.mrb[22].mxu1 %v2152_v34 }
 0x78a   : > { %v2263_v40 = vpop.f32.mrb[22].mxu1 }
 0x78b   : > { %v2264_v41 = vadd.f32 %v2263_v40, %v2190_v39  ;;  %v2265_v42 = vpop.f32.mrb[23].mxu1 }
 0x78c   : > { %v2266_v43 = vadd.f32 %v2265_v42, %v2194_v5 }
 0x78d   : > { %v2269_v47 = vsel %vm2268_vm6, %v2264_v41, -inf }
 0x78e   : > { %v2270_v48 = vsel %vm2268_vm6, %v2266_v43, -inf }
 0x78f   : > { %v2271_v49 = vmax.f32 %v2269_v47, %v2270_v48 }
 0x791   : > { %2272 = vmax.xlane.f32.xlu0 %v2271_v49 }
 0x81e   : > { %v2273_v50 = vpop.xlane.xlu0 %2272 }
 0x81f   : > { %v2274_v51 = vsub.f32 %v2264_v41, %v2273_v50  ;;  %v2275_v52 = vsub.f32 %v2266_v43, %v2273_v50 }
 0x821   : > { %v2276_v53 = vmul.f32 1.442695, %v2274_v51  ;;  %v2278_v45 = vmul.f32 1.442695, %v2275_v52 }
 0x823   : > { %3284 = vpow2.f32 %v2276_v53 }
 0x824   : > { %3286 = vpow2.f32 %v2278_v45 }
 0x82d   : > { %v3285_v54 = vpop.eup %3284 }
 0x82e   : > { %v3287_v55 = vpop.eup %3286  ;;  %v2280_v56 = vsel %vm2268_vm6, %v3285_v54, 0.0 }
 0x82f   : > { %v2281_v44 = vsel %vm2268_vm6, %v3287_v55, 0.0 }
 0x830   : > { %v2282_v46 = vadd.f32 %v2281_v44, %v2280_v56 }
 0x832   : > { %2283 = vadd.xlane.f32.xlu0 %v2282_v46 }
 0x8bf   : > { %v2284_v58 = vpop.xlane.xlu0 %2283 }
 0x8c0   : > { %3288 = vrcp.f32 %v2284_v58 }
 0x8ca   : > { %v3289_v59 = vpop.eup %3288 }
 0x8cb   : > { %v2286_v60 = vmul.f32 %v3289_v59, %v3285_v54  ;;  %v2287_v0 = vmul.f32 %v3289_v59, %v3287_v55 }
 0x8cd   : > { %v2290_v2 = vcombine.low %v2286_v60, %v2287_v0 }
 0x8cf   : > { %v2297_v3 = vrot.slane %v2290_v2, %v2296_v1 }
 0x8d1   : > { %v2304_v4 = vrot.slane %v2297_v3, %v2296_v1 }
 0x8d3   : > { %2310 = vst.msk [vmem:[%s487_s17] sm:$0x3] %vm2308_vm7, %v2304_v4 }
 0x8d4   : > { %3303 = shalt.err (!%p3300_p3)
}
 0x8d5   : > { %s3304_s16 = scalar_lea.hbm %s4312_s29, 32  ;;  %s3308_s17 = scalar_lea.hbm %s4369_s15, 64 }
 0x8d6   : > { %p3305_p4 = scmp.ne.s32.totalorder %s4312_s29, %s3304_s16  ;;  %p3309_p9 = scmp.lt.u32.totalorder %s4312_s29, %s4369_s15 }
 0x8d7   : > { %p3310_p10 = scmp.lt.u32.totalorder %s3308_s17, %s3304_s16  ;;  %p3312_p12 = scmp.lt.u32.totalorder %s3304_s16, %s4312_s29 }
 0x8d8   : > { %p3306_p7 = pnand %p3305_p4, %p3477_p5 }
 0x8d9   : > { %p3311_p11 = por %p3310_p10, %p3309_p9 }
 0x8da   : > { %p3307_p8 = pneg %p3306_p7 }
 0x8db   : > { %p3313_p13 = por %p3312_p12, %p3311_p11 }
 0x8dd   : > { %p3314_p0 = pnand %p3313_p13, %p3307_p8 }
 0x8df   : > { %3317 = shalt.err (!%p3314_p0)
}
 0x8e0   : > { %3217 = dma.vmem_to_hbm [thread:$0]  (%p3477_p5), %s4314_s25, 32, %s4312_s29, %s2312_s30  }
 0x8e1 PF: > { %s4386_s23 = sld [smem:[#allocation7_spill]]  ;;  %s4387_s22 = sld [smem:[#allocation5_spill]] }
 0x8e7   : > { %p3223_p1 = scmp.ge.s32.totalorder %s4386_s23, 2  ;;  %s2338_s26 = sand.u32 1, %s4387_s22  }
 0x8e8   : > { %s2339_s20 = scalar_lea.sflag [#allocation3], %s2338_s26 }
 0x8e9   : > { %p3220_p2 = pnand %p3223_p1, %p3481_p6 }
 0x8eb   : > { %3335 = dma.done.wait (!%p3220_p2), %s2339_s20, 32  }
 0x8ec   : > { %3337 = vsyncadd (!%p3220_p2), %s2339_s20, 4294967264  ;;  %s4389_s21 = sld [smem:[#allocation8_spill]]  ;;  %s4390_s16 = sld [smem:[#allocation6_spill]] }
 0x8ed   : > { %s4391_s20 = sld [smem:[#allocation9_spill]]  ;;  %s4392_s18 = smov %s3344_s19 }
 0x8f2   : > { %p25_p3 = scmp.ge.s32.totalorder %s4389_s21, 4   ;;  %s4393_s19 = smov %s4390_s16 }
 0x8f4   :  { %27 = sbr.rel (!%p25_p3) target bundleno = 3 (0x3), region = 127 }
 0x8fb   :  { %2344 = vsyncpa [#allocation3], 1 }
 0x8fc   :  { %2346 = vsyncpa [#allocation3 + $0x1], 1 }

</bundles_post_ra>
